<compile_context>
chip_gen: v7x
topology: tpu7x:2x2x1
jax: 0.10.0
libtpu: 0.0.40
codegen_flags: <defaults>
</compile_context>

<pallas_src>
import functools

import jax
import jax.numpy as jnp
from jax.experimental import pallas as pl
from jax.experimental.pallas import tpu as pltpu


# ----------------------------------------------------------------------------
# Fused forward kernel
# ----------------------------------------------------------------------------
def _make_fused_kernel(num_layers):
    """Build the fused forward kernel for a fixed number of GRU layers."""

    def kernel(*refs):
        # ---- unpack refs: x, per-layer GRU weights, MLP weights, output ----
        idx = 0
        x_ref = refs[idx]; idx += 1
        gru_refs = []
        for _ in range(num_layers):
            gru_refs.append(refs[idx:idx + 4]); idx += 4
        fc1w_ref, fc1b_ref, propw_ref, propb_ref, fc3w_ref, fc3b_ref = refs[idx:idx + 6]
        idx += 6
        o_ref = refs[idx]

        T, B, Din = x_ref.shape
        H = gru_refs[0][1].shape[0]          # w_hh: (H, 3H)
        H2 = 2 * H

        x = x_ref[...].astype(jnp.float32)   # (T, B, Din) time-major

        def silu(v):
            return v * jax.nn.sigmoid(v)

        finals = []                          # final hidden state of each layer, (B, H)
        # Layer-0 input for the bulk projection: time-major flattening (T*B, Din).
        xin = x.reshape(T * B, Din)
        for layer, (wih_ref, whh_ref, bih_ref, bhh_ref) in enumerate(gru_refs):
            w_ih = wih_ref[...]                                  # bf16 (din, 3H)
            w_hh = whh_ref[...]                                  # bf16 (H, 3H)
            b_ih = bih_ref[...].astype(jnp.float32)              # (1, 3H)
            b_hh = bhh_ref[...].astype(jnp.float32)              # (1, 3H)

            # Hoist the r/z part of b_hh into the precomputed gi bias; the n part
            # must stay inside the per-step r*(...) term.
            b_hh_n = b_hh[:, H2:]
            bias = b_ih + jnp.concatenate(
                [b_hh[:, :H2], jnp.zeros_like(b_hh_n)], axis=-1)

            # ONE bulk input projection for the whole sequence (off the critical path),
            # then a single reshape so the time loop does cheap gi_all[t] tile picks.
            gi_all = (jnp.dot(xin.astype(jnp.bfloat16), w_ih,
                              preferred_element_type=jnp.float32) + bias)
            gi_all = gi_all.reshape(T, B, 3 * H)

            h = jnp.zeros((B, H), jnp.float32)
            hs = []
            for t in range(T):
                gi_t = gi_all[t]                                  # (B, 3H)
                gh = jnp.dot(h.astype(jnp.bfloat16), w_hh,
                             preferred_element_type=jnp.float32)  # (B, 3H), no bias

                # PyTorch gate order (r, z, n): fused sigmoid over the r|z lanes.
                rz = jax.nn.sigmoid(gi_t[:, :H2] + gh[:, :H2])
                r = rz[:, :H]
                z = rz[:, H:]
                n = jnp.tanh(gi_t[:, H2:] + r * (gh[:, H2:] + b_hh_n))
                h = (1.0 - z) * n + z * h
                hs.append(h)

            finals.append(h)
            if layer + 1 < num_layers:
                # Next layer's bulk input projection consumes all steps at once.
                xin = jnp.concatenate(hs, axis=0)                 # (T*B, H)

        # h_n.transpose(0,1).flatten(1,2) == layer-major concat of final hiddens.
        act = jnp.concatenate(finals, axis=-1)                    # (B, L*H)

        # fc1 + SiLU
        act = silu(jnp.dot(act.astype(jnp.bfloat16), fc1w_ref[...],
                           preferred_element_type=jnp.float32) + fc1b_ref[...])

        # 5 prop layers (stacked weights), each Linear + SiLU
        for i in range(propw_ref.shape[0]):
            act = silu(jnp.dot(act.astype(jnp.bfloat16), propw_ref[i],
                               preferred_element_type=jnp.float32) + propb_ref[i])

        # fc3 — output padded to a lane-dense 128-wide slab (wrapper slices it back).
        y = (jnp.dot(act.astype(jnp.bfloat16), fc3w_ref[...],
                     preferred_element_type=jnp.float32) + fc3b_ref[...])
        o_ref[...] = y.astype(o_ref.dtype)

    return kernel


# ----------------------------------------------------------------------------
# Public forward: one pallas_call for the whole module.
# ----------------------------------------------------------------------------
def gru_pred_forward(x, params, *, output_size):
    """x: (B, T, input_size) batch-first, like the PyTorch module."""
    B, T, Din = x.shape
    gru_layers = params["gru_layers"]
    num_layers = len(gru_layers)
    H = gru_layers[0][1].shape[0]
    LH = params["fc1_w"].shape[1]
    out_pad = params["fc3_w"].shape[1]

    # Time-major input so the kernel's bulk projection / per-step indexing is direct.
    x_tbd = jnp.transpose(x, (1, 0, 2))                            # (T, B, Din)

    bf16 = jnp.bfloat16
    flat_inputs = [x_tbd]
    for (w_ih, w_hh, b_ih, b_hh) in gru_layers:
        flat_inputs += [w_ih.astype(bf16), w_hh.astype(bf16), b_ih, b_hh]
    flat_inputs += [params["fc1_w"].astype(bf16), params["fc1_b"],
                    params["prop_w"].astype(bf16), params["prop_b"],
                    params["fc3_w"].astype(bf16), params["fc3_b"]]

    # Rough cost hint for XLA's scheduler around this latency-bound custom call.
    num_prop = params["prop_w"].shape[0]
    flops = (2 * T * B * Din * 3 * H                       # layer-0 input projection
             + (2 * num_layers - 1) * 2 * T * B * H * 3 * H  # hidden + deeper-layer proj
             + 2 * B * (num_layers * H) * LH                # fc1
             + num_prop * 2 * B * LH * LH                   # prop layers
             + 2 * B * LH * out_pad)                        # fc3
    transcendentals = num_layers * T * B * 3 * H + (num_prop + 1) * B * LH
    bytes_accessed = sum(int(a.size) * a.dtype.itemsize for a in flat_inputs) \
        + B * out_pad * 4

    out_padded = pl.pallas_call(
        _make_fused_kernel(num_layers),
        out_shape=jax.ShapeDtypeStruct((B, out_pad), jnp.float32),
        in_specs=[pl.BlockSpec(memory_space=pltpu.MemorySpace.VMEM)
                  for _ in flat_inputs],
        out_specs=pl.BlockSpec(memory_space=pltpu.MemorySpace.VMEM),
        cost_estimate=pl.CostEstimate(flops=int(flops),
                                      transcendentals=int(transcendentals),
                                      bytes_accessed=int(bytes_accessed)),
    )(*flat_inputs)
    return out_padded[:, :output_size]


# ----------------------------------------------------------------------------
# Pure-JAX reference (all f32; correctness check against the Pallas path).
# ----------------------------------------------------------------------------
def gru_pred_reference(x, params, *, output_size):
    B = x.shape[0]
    layer_in = jnp.transpose(x, (1, 0, 2))          # (T, B, D) time-major
    finals = []
    for (w_ih, w_hh, b_ih, b_hh) in params["gru_layers"]:
        H = w_hh.shape[0]

        def step(h, x_t, w_ih=w_ih, w_hh=w_hh, b_ih=b_ih, b_hh=b_hh, H=H):
            gi = x_t @ w_ih + b_ih
            gh = h @ w_hh + b_hh
            r = jax.nn.sigmoid(gi[:, :H] + gh[:, :H])
            z = jax.nn.sigmoid(gi[:, H:2 * H] + gh[:, H:2 * H])
            n = jnp.tanh(gi[:, 2 * H:] + r * gh[:, 2 * H:])
            h_new = (1.0 - z) * n + z * h
            return h_new, h_new

        h0 = jnp.zeros((B, H), jnp.float32)
        h_last, h_seq = jax.lax.scan(step, h0, layer_in)
        finals.append(h_last)
        layer_in = h_seq

    out = jnp.concatenate(finals, axis=-1)

    def silu(v):
        return v * jax.nn.sigmoid(v)

    out = silu(out @ params["fc1_w"] + params["fc1_b"])
    for i in range(params["prop_w"].shape[0]):
        out = silu(out @ params["prop_w"][i] + params["prop_b"][i])
    out = out @ params["fc3_w"] + params["fc3_b"]
    return out[:, :output_size]


# ----------------------------------------------------------------------------
# Deterministic parameter initialization (PyTorch-style uniform ranges; weights
# stored in the kernel layout: (in, out) matrices with PyTorch gate column order
# (r|z|n), stacked prop layers, fc3 padded to 128 output lanes).
# NOTE: a loader from a real nn.GRU must transpose torch's (3H, in) weight_ih/hh
# to (in, 3H) and keep the (r, z, n) gate-block order.
# ----------------------------------------------------------------------------
def init_params(key, input_size, hidden, num_layers, output_size, lin_hidden,
                num_prop=5, lane_pad=128):
    def uni(k, shape, bound):
        return jax.random.uniform(k, shape, jnp.float32, -bound, bound)

    params = {"gru_layers": []}
    kg = 1.0 / (hidden ** 0.5)
    for layer in range(num_layers):
        din = input_size if layer == 0 else hidden
        key, k1, k2, k3, k4 = jax.random.split(key, 5)
        params["gru_layers"].append((
            uni(k1, (din, 3 * hidden), kg),        # W_ih^T  (packed r|z|n)
            uni(k2, (hidden, 3 * hidden), kg),     # W_hh^T  (packed r|z|n)
            uni(k3, (1, 3 * hidden), kg),          # b_ih
            uni(k4, (1, 3 * hidden), kg),          # b_hh
        ))

    key, k1, k2 = jax.random.split(key, 3)
    kf = 1.0 / ((hidden * num_layers) ** 0.5)
    params["fc1_w"] = uni(k1, (hidden * num_layers, lin_hidden), kf)
    params["fc1_b"] = uni(k2, (1, lin_hidden), kf)

    kp = 1.0 / (lin_hidden ** 0.5)
    key, k1, k2 = jax.random.split(key, 3)
    params["prop_w"] = uni(k1, (num_prop, lin_hidden, lin_hidden), kp)   # stacked
    params["prop_b"] = uni(k2, (num_prop, 1, lin_hidden), kp)

    out_pad = ((output_size + lane_pad - 1) // lane_pad) * lane_pad
    key, k1, k2 = jax.random.split(key, 3)
    fc3_w = uni(k1, (lin_hidden, output_size), kp)
    fc3_b = uni(k2, (1, output_size), kp)
    params["fc3_w"] = jnp.pad(fc3_w, ((0, 0), (0, out_pad - output_size)))
    params["fc3_b"] = jnp.pad(fc3_b, ((0, 0), (0, out_pad - output_size)))
    return params


if __name__ == "__main__":
    # Small shapes consistent with the module.
    INPUT_SIZE = 8
    GRU_HIDDEN = 32
    GRU_LAYERS = 2
    OUTPUT_SIZE = 4
    LIN_HIDDEN = 128
    BATCH = 2
    SEQ = 8

    key = jax.random.PRNGKey(0)
    key, kx = jax.random.split(key)
    x = jax.random.normal(kx, (BATCH, SEQ, INPUT_SIZE), jnp.float32)  # (B, T, D)

    params = init_params(key, INPUT_SIZE, GRU_HIDDEN, GRU_LAYERS, OUTPUT_SIZE, LIN_HIDDEN)

    fwd = jax.jit(functools.partial(gru_pred_forward, output_size=OUTPUT_SIZE))
    ref_fn = jax.jit(functools.partial(gru_pred_reference, output_size=OUTPUT_SIZE))

    out = jax.block_until_ready(fwd(x, params))
    ref = jax.block_until_ready(ref_fn(x, params))

    assert out.shape == (BATCH, OUTPUT_SIZE), out.shape
    # 1e-2 tolerance is the intentional budget for the bf16 MXU matmuls against the
    # all-f32 reference (observed error is orders of magnitude smaller).
    assert jnp.allclose(out, ref, rtol=1e-2, atol=1e-2), (out, ref)

    print("KERNEL_OK")
</pallas_src>

<mosaic_0001>
module attributes {stable_mosaic.version = 11 : i64} {
  func.func @kernel(%arg0: memref<8x2x8xf32, #tpu.memory_space<vmem>>, %arg1: memref<8x96xbf16, #tpu.memory_space<vmem>>, %arg2: memref<32x96xbf16, #tpu.memory_space<vmem>>, %arg3: memref<1x96xf32, #tpu.memory_space<vmem>>, %arg4: memref<1x96xf32, #tpu.memory_space<vmem>>, %arg5: memref<32x96xbf16, #tpu.memory_space<vmem>>, %arg6: memref<32x96xbf16, #tpu.memory_space<vmem>>, %arg7: memref<1x96xf32, #tpu.memory_space<vmem>>, %arg8: memref<1x96xf32, #tpu.memory_space<vmem>>, %arg9: memref<64x128xbf16, #tpu.memory_space<vmem>>, %arg10: memref<1x128xf32, #tpu.memory_space<vmem>>, %arg11: memref<5x128x128xbf16, #tpu.memory_space<vmem>>, %arg12: memref<5x1x128xf32, #tpu.memory_space<vmem>>, %arg13: memref<128x128xbf16, #tpu.memory_space<vmem>>, %arg14: memref<1x128xf32, #tpu.memory_space<vmem>>, %arg15: memref<2x128xf32, #tpu.memory_space<vmem>>) attributes {dimension_semantics = [], scalar_prefetch = 0 : i64, scratch_operands = 0 : i64, tpu.core_type = #tpu.core_type<tc>} {
    %c0 = arith.constant 0 : index
    %c0_0 = arith.constant 0 : index
    %c0_1 = arith.constant 0 : index
    %0 = vector.load %arg0[%c0, %c0_0, %c0_1] : memref<8x2x8xf32, #tpu.memory_space<vmem>>, vector<8x2x8xf32>
    %1 = vector.shape_cast %0 : vector<8x2x8xf32> to vector<16x8xf32>
    %c0_2 = arith.constant 0 : index
    %c0_3 = arith.constant 0 : index
    %2 = vector.load %arg1[%c0_2, %c0_3] : memref<8x96xbf16, #tpu.memory_space<vmem>>, vector<8x96xbf16>
    %c0_4 = arith.constant 0 : index
    %c0_5 = arith.constant 0 : index
    %3 = vector.load %arg2[%c0_4, %c0_5] : memref<32x96xbf16, #tpu.memory_space<vmem>>, vector<32x96xbf16>
    %c0_6 = arith.constant 0 : index
    %c0_7 = arith.constant 0 : index
    %4 = vector.load %arg3[%c0_6, %c0_7] : memref<1x96xf32, #tpu.memory_space<vmem>>, vector<1x96xf32>
    %c0_8 = arith.constant 0 : index
    %c0_9 = arith.constant 0 : index
    %5 = vector.load %arg4[%c0_8, %c0_9] : memref<1x96xf32, #tpu.memory_space<vmem>>, vector<1x96xf32>
    %6 = vector.extract_strided_slice %5 {offsets = [0, 64], sizes = [1, 32], strides = [1, 1]} : vector<1x96xf32> to vector<1x32xf32>
    %7 = vector.extract_strided_slice %5 {offsets = [0, 0], sizes = [1, 64], strides = [1, 1]} : vector<1x96xf32> to vector<1x64xf32>
    %cst = arith.constant 0.000000e+00 : f32
    %8 = vector.broadcast %cst : f32 to vector<1x32xf32>
    %9 = tpu.concatenate %7, %8 in 1 : vector<1x64xf32>, vector<1x32xf32> -> vector<1x96xf32>
    %10 = arith.addf %4, %9 : vector<1x96xf32>
    %11 = arith.truncf %1 : vector<16x8xf32> to vector<16x8xbf16>
    %cst_10 = arith.constant dense<0.000000e+00> : vector<16x96xf32>
    %12 = tpu.matmul %11, %2, %cst_10 {dimension_numbers = #tpu.dot_dimension_numbers<[1], [0], [0], [1], [0, 0, 1, 1], [], []>} : vector<16x8xbf16>, vector<8x96xbf16>, vector<16x96xf32> -> vector<16x96xf32>
    %13 = vector.broadcast %10 : vector<1x96xf32> to vector<16x96xf32>
    %14 = arith.addf %12, %13 : vector<16x96xf32>
    %15 = vector.shape_cast %14 : vector<16x96xf32> to vector<8x2x96xf32>
    %cst_11 = arith.constant 0.000000e+00 : f32
    %16 = vector.broadcast %cst_11 : f32 to vector<2x32xf32>
    %17 = vector.extract_strided_slice %15 {offsets = [0, 0, 0], sizes = [1, 2, 96], strides = [1, 1, 1]} : vector<8x2x96xf32> to vector<1x2x96xf32>
    %18 = vector.shape_cast %17 : vector<1x2x96xf32> to vector<2x96xf32>
    %19 = arith.truncf %16 : vector<2x32xf32> to vector<2x32xbf16>
    %cst_12 = arith.constant dense<0.000000e+00> : vector<2x96xf32>
    %20 = tpu.matmul %19, %3, %cst_12 {dimension_numbers = #tpu.dot_dimension_numbers<[1], [0], [0], [1], [0, 0, 1, 1], [], []>} : vector<2x32xbf16>, vector<32x96xbf16>, vector<2x96xf32> -> vector<2x96xf32>
    %21 = vector.extract_strided_slice %18 {offsets = [0, 0], sizes = [2, 64], strides = [1, 1]} : vector<2x96xf32> to vector<2x64xf32>
    %22 = vector.extract_strided_slice %20 {offsets = [0, 0], sizes = [2, 64], strides = [1, 1]} : vector<2x96xf32> to vector<2x64xf32>
    %23 = arith.addf %21, %22 : vector<2x64xf32>
    %24 = arith.negf %23 : vector<2x64xf32>
    %25 = math.exp %24 : vector<2x64xf32>
    %cst_13 = arith.constant 1.000000e+00 : f32
    %26 = vector.broadcast %cst_13 : f32 to vector<2x64xf32>
    %27 = arith.addf %26, %25 : vector<2x64xf32>
    %28 = arith.divf %26, %27 : vector<2x64xf32>
    %29 = vector.extract_strided_slice %28 {offsets = [0, 0], sizes = [2, 32], strides = [1, 1]} : vector<2x64xf32> to vector<2x32xf32>
    %30 = vector.extract_strided_slice %28 {offsets = [0, 32], sizes = [2, 32], strides = [1, 1]} : vector<2x64xf32> to vector<2x32xf32>
    %31 = vector.extract_strided_slice %18 {offsets = [0, 64], sizes = [2, 32], strides = [1, 1]} : vector<2x96xf32> to vector<2x32xf32>
    %32 = vector.extract_strided_slice %20 {offsets = [0, 64], sizes = [2, 32], strides = [1, 1]} : vector<2x96xf32> to vector<2x32xf32>
    %33 = vector.broadcast %6 : vector<1x32xf32> to vector<2x32xf32>
    %34 = arith.addf %32, %33 : vector<2x32xf32>
    %35 = arith.mulf %29, %34 : vector<2x32xf32>
    %36 = arith.addf %31, %35 : vector<2x32xf32>
    %37 = math.tanh %36 : vector<2x32xf32>
    %cst_14 = arith.constant 1.000000e+00 : f32
    %38 = vector.broadcast %cst_14 : f32 to vector<2x32xf32>
    %39 = arith.subf %38, %30 : vector<2x32xf32>
    %40 = arith.mulf %39, %37 : vector<2x32xf32>
    %41 = arith.mulf %30, %16 : vector<2x32xf32>
    %42 = arith.addf %40, %41 : vector<2x32xf32>
    %43 = vector.extract_strided_slice %15 {offsets = [1, 0, 0], sizes = [1, 2, 96], strides = [1, 1, 1]} : vector<8x2x96xf32> to vector<1x2x96xf32>
    %44 = vector.shape_cast %43 : vector<1x2x96xf32> to vector<2x96xf32>
    %45 = arith.truncf %42 : vector<2x32xf32> to vector<2x32xbf16>
    %cst_15 = arith.constant dense<0.000000e+00> : vector<2x96xf32>
    %46 = tpu.matmul %45, %3, %cst_15 {dimension_numbers = #tpu.dot_dimension_numbers<[1], [0], [0], [1], [0, 0, 1, 1], [], []>} : vector<2x32xbf16>, vector<32x96xbf16>, vector<2x96xf32> -> vector<2x96xf32>
    %47 = vector.extract_strided_slice %44 {offsets = [0, 0], sizes = [2, 64], strides = [1, 1]} : vector<2x96xf32> to vector<2x64xf32>
    %48 = vector.extract_strided_slice %46 {offsets = [0, 0], sizes = [2, 64], strides = [1, 1]} : vector<2x96xf32> to vector<2x64xf32>
    %49 = arith.addf %47, %48 : vector<2x64xf32>
    %50 = arith.negf %49 : vector<2x64xf32>
    %51 = math.exp %50 : vector<2x64xf32>
    %cst_16 = arith.constant 1.000000e+00 : f32
    %52 = vector.broadcast %cst_16 : f32 to vector<2x64xf32>
    %53 = arith.addf %52, %51 : vector<2x64xf32>
    %54 = arith.divf %52, %53 : vector<2x64xf32>
    %55 = vector.extract_strided_slice %54 {offsets = [0, 0], sizes = [2, 32], strides = [1, 1]} : vector<2x64xf32> to vector<2x32xf32>
    %56 = vector.extract_strided_slice %54 {offsets = [0, 32], sizes = [2, 32], strides = [1, 1]} : vector<2x64xf32> to vector<2x32xf32>
    %57 = vector.extract_strided_slice %44 {offsets = [0, 64], sizes = [2, 32], strides = [1, 1]} : vector<2x96xf32> to vector<2x32xf32>
    %58 = vector.extract_strided_slice %46 {offsets = [0, 64], sizes = [2, 32], strides = [1, 1]} : vector<2x96xf32> to vector<2x32xf32>
    %59 = vector.broadcast %6 : vector<1x32xf32> to vector<2x32xf32>
    %60 = arith.addf %58, %59 : vector<2x32xf32>
    %61 = arith.mulf %55, %60 : vector<2x32xf32>
    %62 = arith.addf %57, %61 : vector<2x32xf32>
    %63 = math.tanh %62 : vector<2x32xf32>
    %cst_17 = arith.constant 1.000000e+00 : f32
    %64 = vector.broadcast %cst_17 : f32 to vector<2x32xf32>
    %65 = arith.subf %64, %56 : vector<2x32xf32>
    %66 = arith.mulf %65, %63 : vector<2x32xf32>
    %67 = arith.mulf %56, %42 : vector<2x32xf32>
    %68 = arith.addf %66, %67 : vector<2x32xf32>
    %69 = vector.extract_strided_slice %15 {offsets = [2, 0, 0], sizes = [1, 2, 96], strides = [1, 1, 1]} : vector<8x2x96xf32> to vector<1x2x96xf32>
    %70 = vector.shape_cast %69 : vector<1x2x96xf32> to vector<2x96xf32>
    %71 = arith.truncf %68 : vector<2x32xf32> to vector<2x32xbf16>
    %cst_18 = arith.constant dense<0.000000e+00> : vector<2x96xf32>
    %72 = tpu.matmul %71, %3, %cst_18 {dimension_numbers = #tpu.dot_dimension_numbers<[1], [0], [0], [1], [0, 0, 1, 1], [], []>} : vector<2x32xbf16>, vector<32x96xbf16>, vector<2x96xf32> -> vector<2x96xf32>
    %73 = vector.extract_strided_slice %70 {offsets = [0, 0], sizes = [2, 64], strides = [1, 1]} : vector<2x96xf32> to vector<2x64xf32>
    %74 = vector.extract_strided_slice %72 {offsets = [0, 0], sizes = [2, 64], strides = [1, 1]} : vector<2x96xf32> to vector<2x64xf32>
    %75 = arith.addf %73, %74 : vector<2x64xf32>
    %76 = arith.negf %75 : vector<2x64xf32>
    %77 = math.exp %76 : vector<2x64xf32>
    %cst_19 = arith.constant 1.000000e+00 : f32
    %78 = vector.broadcast %cst_19 : f32 to vector<2x64xf32>
    %79 = arith.addf %78, %77 : vector<2x64xf32>
    %80 = arith.divf %78, %79 : vector<2x64xf32>
    %81 = vector.extract_strided_slice %80 {offsets = [0, 0], sizes = [2, 32], strides = [1, 1]} : vector<2x64xf32> to vector<2x32xf32>
    %82 = vector.extract_strided_slice %80 {offsets = [0, 32], sizes = [2, 32], strides = [1, 1]} : vector<2x64xf32> to vector<2x32xf32>
    %83 = vector.extract_strided_slice %70 {offsets = [0, 64], sizes = [2, 32], strides = [1, 1]} : vector<2x96xf32> to vector<2x32xf32>
    %84 = vector.extract_strided_slice %72 {offsets = [0, 64], sizes = [2, 32], strides = [1, 1]} : vector<2x96xf32> to vector<2x32xf32>
    %85 = vector.broadcast %6 : vector<1x32xf32> to vector<2x32xf32>
    %86 = arith.addf %84, %85 : vector<2x32xf32>
    %87 = arith.mulf %81, %86 : vector<2x32xf32>
    %88 = arith.addf %83, %87 : vector<2x32xf32>
    %89 = math.tanh %88 : vector<2x32xf32>
    %cst_20 = arith.constant 1.000000e+00 : f32
    %90 = vector.broadcast %cst_20 : f32 to vector<2x32xf32>
    %91 = arith.subf %90, %82 : vector<2x32xf32>
    %92 = arith.mulf %91, %89 : vector<2x32xf32>
    %93 = arith.mulf %82, %68 : vector<2x32xf32>
    %94 = arith.addf %92, %93 : vector<2x32xf32>
    %95 = vector.extract_strided_slice %15 {offsets = [3, 0, 0], sizes = [1, 2, 96], strides = [1, 1, 1]} : vector<8x2x96xf32> to vector<1x2x96xf32>
    %96 = vector.shape_cast %95 : vector<1x2x96xf32> to vector<2x96xf32>
    %97 = arith.truncf %94 : vector<2x32xf32> to vector<2x32xbf16>
    %cst_21 = arith.constant dense<0.000000e+00> : vector<2x96xf32>
    %98 = tpu.matmul %97, %3, %cst_21 {dimension_numbers = #tpu.dot_dimension_numbers<[1], [0], [0], [1], [0, 0, 1, 1], [], []>} : vector<2x32xbf16>, vector<32x96xbf16>, vector<2x96xf32> -> vector<2x96xf32>
    %99 = vector.extract_strided_slice %96 {offsets = [0, 0], sizes = [2, 64], strides = [1, 1]} : vector<2x96xf32> to vector<2x64xf32>
    %100 = vector.extract_strided_slice %98 {offsets = [0, 0], sizes = [2, 64], strides = [1, 1]} : vector<2x96xf32> to vector<2x64xf32>
    %101 = arith.addf %99, %100 : vector<2x64xf32>
    %102 = arith.negf %101 : vector<2x64xf32>
    %103 = math.exp %102 : vector<2x64xf32>
    %cst_22 = arith.constant 1.000000e+00 : f32
    %104 = vector.broadcast %cst_22 : f32 to vector<2x64xf32>
    %105 = arith.addf %104, %103 : vector<2x64xf32>
    %106 = arith.divf %104, %105 : vector<2x64xf32>
    %107 = vector.extract_strided_slice %106 {offsets = [0, 0], sizes = [2, 32], strides = [1, 1]} : vector<2x64xf32> to vector<2x32xf32>
    %108 = vector.extract_strided_slice %106 {offsets = [0, 32], sizes = [2, 32], strides = [1, 1]} : vector<2x64xf32> to vector<2x32xf32>
    %109 = vector.extract_strided_slice %96 {offsets = [0, 64], sizes = [2, 32], strides = [1, 1]} : vector<2x96xf32> to vector<2x32xf32>
    %110 = vector.extract_strided_slice %98 {offsets = [0, 64], sizes = [2, 32], strides = [1, 1]} : vector<2x96xf32> to vector<2x32xf32>
    %111 = vector.broadcast %6 : vector<1x32xf32> to vector<2x32xf32>
    %112 = arith.addf %110, %111 : vector<2x32xf32>
    %113 = arith.mulf %107, %112 : vector<2x32xf32>
    %114 = arith.addf %109, %113 : vector<2x32xf32>
    %115 = math.tanh %114 : vector<2x32xf32>
    %cst_23 = arith.constant 1.000000e+00 : f32
    %116 = vector.broadcast %cst_23 : f32 to vector<2x32xf32>
    %117 = arith.subf %116, %108 : vector<2x32xf32>
    %118 = arith.mulf %117, %115 : vector<2x32xf32>
    %119 = arith.mulf %108, %94 : vector<2x32xf32>
    %120 = arith.addf %118, %119 : vector<2x32xf32>
    %121 = vector.extract_strided_slice %15 {offsets = [4, 0, 0], sizes = [1, 2, 96], strides = [1, 1, 1]} : vector<8x2x96xf32> to vector<1x2x96xf32>
    %122 = vector.shape_cast %121 : vector<1x2x96xf32> to vector<2x96xf32>
    %123 = arith.truncf %120 : vector<2x32xf32> to vector<2x32xbf16>
    %cst_24 = arith.constant dense<0.000000e+00> : vector<2x96xf32>
    %124 = tpu.matmul %123, %3, %cst_24 {dimension_numbers = #tpu.dot_dimension_numbers<[1], [0], [0], [1], [0, 0, 1, 1], [], []>} : vector<2x32xbf16>, vector<32x96xbf16>, vector<2x96xf32> -> vector<2x96xf32>
    %125 = vector.extract_strided_slice %122 {offsets = [0, 0], sizes = [2, 64], strides = [1, 1]} : vector<2x96xf32> to vector<2x64xf32>
    %126 = vector.extract_strided_slice %124 {offsets = [0, 0], sizes = [2, 64], strides = [1, 1]} : vector<2x96xf32> to vector<2x64xf32>
    %127 = arith.addf %125, %126 : vector<2x64xf32>
    %128 = arith.negf %127 : vector<2x64xf32>
    %129 = math.exp %128 : vector<2x64xf32>
    %cst_25 = arith.constant 1.000000e+00 : f32
    %130 = vector.broadcast %cst_25 : f32 to vector<2x64xf32>
    %131 = arith.addf %130, %129 : vector<2x64xf32>
    %132 = arith.divf %130, %131 : vector<2x64xf32>
    %133 = vector.extract_strided_slice %132 {offsets = [0, 0], sizes = [2, 32], strides = [1, 1]} : vector<2x64xf32> to vector<2x32xf32>
    %134 = vector.extract_strided_slice %132 {offsets = [0, 32], sizes = [2, 32], strides = [1, 1]} : vector<2x64xf32> to vector<2x32xf32>
    %135 = vector.extract_strided_slice %122 {offsets = [0, 64], sizes = [2, 32], strides = [1, 1]} : vector<2x96xf32> to vector<2x32xf32>
    %136 = vector.extract_strided_slice %124 {offsets = [0, 64], sizes = [2, 32], strides = [1, 1]} : vector<2x96xf32> to vector<2x32xf32>
    %137 = vector.broadcast %6 : vector<1x32xf32> to vector<2x32xf32>
    %138 = arith.addf %136, %137 : vector<2x32xf32>
    %139 = arith.mulf %133, %138 : vector<2x32xf32>
    %140 = arith.addf %135, %139 : vector<2x32xf32>
    %141 = math.tanh %140 : vector<2x32xf32>
    %cst_26 = arith.constant 1.000000e+00 : f32
    %142 = vector.broadcast %cst_26 : f32 to vector<2x32xf32>
    %143 = arith.subf %142, %134 : vector<2x32xf32>
    %144 = arith.mulf %143, %141 : vector<2x32xf32>
    %145 = arith.mulf %134, %120 : vector<2x32xf32>
    %146 = arith.addf %144, %145 : vector<2x32xf32>
    %147 = vector.extract_strided_slice %15 {offsets = [5, 0, 0], sizes = [1, 2, 96], strides = [1, 1, 1]} : vector<8x2x96xf32> to vector<1x2x96xf32>
    %148 = vector.shape_cast %147 : vector<1x2x96xf32> to vector<2x96xf32>
    %149 = arith.truncf %146 : vector<2x32xf32> to vector<2x32xbf16>
    %cst_27 = arith.constant dense<0.000000e+00> : vector<2x96xf32>
    %150 = tpu.matmul %149, %3, %cst_27 {dimension_numbers = #tpu.dot_dimension_numbers<[1], [0], [0], [1], [0, 0, 1, 1], [], []>} : vector<2x32xbf16>, vector<32x96xbf16>, vector<2x96xf32> -> vector<2x96xf32>
    %151 = vector.extract_strided_slice %148 {offsets = [0, 0], sizes = [2, 64], strides = [1, 1]} : vector<2x96xf32> to vector<2x64xf32>
    %152 = vector.extract_strided_slice %150 {offsets = [0, 0], sizes = [2, 64], strides = [1, 1]} : vector<2x96xf32> to vector<2x64xf32>
    %153 = arith.addf %151, %152 : vector<2x64xf32>
    %154 = arith.negf %153 : vector<2x64xf32>
    %155 = math.exp %154 : vector<2x64xf32>
    %cst_28 = arith.constant 1.000000e+00 : f32
    %156 = vector.broadcast %cst_28 : f32 to vector<2x64xf32>
    %157 = arith.addf %156, %155 : vector<2x64xf32>
    %158 = arith.divf %156, %157 : vector<2x64xf32>
    %159 = vector.extract_strided_slice %158 {offsets = [0, 0], sizes = [2, 32], strides = [1, 1]} : vector<2x64xf32> to vector<2x32xf32>
    %160 = vector.extract_strided_slice %158 {offsets = [0, 32], sizes = [2, 32], strides = [1, 1]} : vector<2x64xf32> to vector<2x32xf32>
    %161 = vector.extract_strided_slice %148 {offsets = [0, 64], sizes = [2, 32], strides = [1, 1]} : vector<2x96xf32> to vector<2x32xf32>
    %162 = vector.extract_strided_slice %150 {offsets = [0, 64], sizes = [2, 32], strides = [1, 1]} : vector<2x96xf32> to vector<2x32xf32>
    %163 = vector.broadcast %6 : vector<1x32xf32> to vector<2x32xf32>
    %164 = arith.addf %162, %163 : vector<2x32xf32>
    %165 = arith.mulf %159, %164 : vector<2x32xf32>
    %166 = arith.addf %161, %165 : vector<2x32xf32>
    %167 = math.tanh %166 : vector<2x32xf32>
    %cst_29 = arith.constant 1.000000e+00 : f32
    %168 = vector.broadcast %cst_29 : f32 to vector<2x32xf32>
    %169 = arith.subf %168, %160 : vector<2x32xf32>
    %170 = arith.mulf %169, %167 : vector<2x32xf32>
    %171 = arith.mulf %160, %146 : vector<2x32xf32>
    %172 = arith.addf %170, %171 : vector<2x32xf32>
    %173 = vector.extract_strided_slice %15 {offsets = [6, 0, 0], sizes = [1, 2, 96], strides = [1, 1, 1]} : vector<8x2x96xf32> to vector<1x2x96xf32>
    %174 = vector.shape_cast %173 : vector<1x2x96xf32> to vector<2x96xf32>
    %175 = arith.truncf %172 : vector<2x32xf32> to vector<2x32xbf16>
    %cst_30 = arith.constant dense<0.000000e+00> : vector<2x96xf32>
    %176 = tpu.matmul %175, %3, %cst_30 {dimension_numbers = #tpu.dot_dimension_numbers<[1], [0], [0], [1], [0, 0, 1, 1], [], []>} : vector<2x32xbf16>, vector<32x96xbf16>, vector<2x96xf32> -> vector<2x96xf32>
    %177 = vector.extract_strided_slice %174 {offsets = [0, 0], sizes = [2, 64], strides = [1, 1]} : vector<2x96xf32> to vector<2x64xf32>
    %178 = vector.extract_strided_slice %176 {offsets = [0, 0], sizes = [2, 64], strides = [1, 1]} : vector<2x96xf32> to vector<2x64xf32>
    %179 = arith.addf %177, %178 : vector<2x64xf32>
    %180 = arith.negf %179 : vector<2x64xf32>
    %181 = math.exp %180 : vector<2x64xf32>
    %cst_31 = arith.constant 1.000000e+00 : f32
    %182 = vector.broadcast %cst_31 : f32 to vector<2x64xf32>
    %183 = arith.addf %182, %181 : vector<2x64xf32>
    %184 = arith.divf %182, %183 : vector<2x64xf32>
    %185 = vector.extract_strided_slice %184 {offsets = [0, 0], sizes = [2, 32], strides = [1, 1]} : vector<2x64xf32> to vector<2x32xf32>
    %186 = vector.extract_strided_slice %184 {offsets = [0, 32], sizes = [2, 32], strides = [1, 1]} : vector<2x64xf32> to vector<2x32xf32>
    %187 = vector.extract_strided_slice %174 {offsets = [0, 64], sizes = [2, 32], strides = [1, 1]} : vector<2x96xf32> to vector<2x32xf32>
    %188 = vector.extract_strided_slice %176 {offsets = [0, 64], sizes = [2, 32], strides = [1, 1]} : vector<2x96xf32> to vector<2x32xf32>
    %189 = vector.broadcast %6 : vector<1x32xf32> to vector<2x32xf32>
    %190 = arith.addf %188, %189 : vector<2x32xf32>
    %191 = arith.mulf %185, %190 : vector<2x32xf32>
    %192 = arith.addf %187, %191 : vector<2x32xf32>
    %193 = math.tanh %192 : vector<2x32xf32>
    %cst_32 = arith.constant 1.000000e+00 : f32
    %194 = vector.broadcast %cst_32 : f32 to vector<2x32xf32>
    %195 = arith.subf %194, %186 : vector<2x32xf32>
    %196 = arith.mulf %195, %193 : vector<2x32xf32>
    %197 = arith.mulf %186, %172 : vector<2x32xf32>
    %198 = arith.addf %196, %197 : vector<2x32xf32>
    %199 = vector.extract_strided_slice %15 {offsets = [7, 0, 0], sizes = [1, 2, 96], strides = [1, 1, 1]} : vector<8x2x96xf32> to vector<1x2x96xf32>
    %200 = vector.shape_cast %199 : vector<1x2x96xf32> to vector<2x96xf32>
    %201 = arith.truncf %198 : vector<2x32xf32> to vector<2x32xbf16>
    %cst_33 = arith.constant dense<0.000000e+00> : vector<2x96xf32>
    %202 = tpu.matmul %201, %3, %cst_33 {dimension_numbers = #tpu.dot_dimension_numbers<[1], [0], [0], [1], [0, 0, 1, 1], [], []>} : vector<2x32xbf16>, vector<32x96xbf16>, vector<2x96xf32> -> vector<2x96xf32>
    %203 = vector.extract_strided_slice %200 {offsets = [0, 0], sizes = [2, 64], strides = [1, 1]} : vector<2x96xf32> to vector<2x64xf32>
    %204 = vector.extract_strided_slice %202 {offsets = [0, 0], sizes = [2, 64], strides = [1, 1]} : vector<2x96xf32> to vector<2x64xf32>
    %205 = arith.addf %203, %204 : vector<2x64xf32>
    %206 = arith.negf %205 : vector<2x64xf32>
    %207 = math.exp %206 : vector<2x64xf32>
    %cst_34 = arith.constant 1.000000e+00 : f32
    %208 = vector.broadcast %cst_34 : f32 to vector<2x64xf32>
    %209 = arith.addf %208, %207 : vector<2x64xf32>
    %210 = arith.divf %208, %209 : vector<2x64xf32>
    %211 = vector.extract_strided_slice %210 {offsets = [0, 0], sizes = [2, 32], strides = [1, 1]} : vector<2x64xf32> to vector<2x32xf32>
    %212 = vector.extract_strided_slice %210 {offsets = [0, 32], sizes = [2, 32], strides = [1, 1]} : vector<2x64xf32> to vector<2x32xf32>
    %213 = vector.extract_strided_slice %200 {offsets = [0, 64], sizes = [2, 32], strides = [1, 1]} : vector<2x96xf32> to vector<2x32xf32>
    %214 = vector.extract_strided_slice %202 {offsets = [0, 64], sizes = [2, 32], strides = [1, 1]} : vector<2x96xf32> to vector<2x32xf32>
    %215 = vector.broadcast %6 : vector<1x32xf32> to vector<2x32xf32>
    %216 = arith.addf %214, %215 : vector<2x32xf32>
    %217 = arith.mulf %211, %216 : vector<2x32xf32>
    %218 = arith.addf %213, %217 : vector<2x32xf32>
    %219 = math.tanh %218 : vector<2x32xf32>
    %cst_35 = arith.constant 1.000000e+00 : f32
    %220 = vector.broadcast %cst_35 : f32 to vector<2x32xf32>
    %221 = arith.subf %220, %212 : vector<2x32xf32>
    %222 = arith.mulf %221, %219 : vector<2x32xf32>
    %223 = arith.mulf %212, %198 : vector<2x32xf32>
    %224 = arith.addf %222, %223 : vector<2x32xf32>
    %225 = tpu.concatenate %42, %68, %94, %120, %146, %172, %198, %224 in 0 : vector<2x32xf32>, vector<2x32xf32>, vector<2x32xf32>, vector<2x32xf32>, vector<2x32xf32>, vector<2x32xf32>, vector<2x32xf32>, vector<2x32xf32> -> vector<16x32xf32>
    %c0_36 = arith.constant 0 : index
    %c0_37 = arith.constant 0 : index
    %226 = vector.load %arg5[%c0_36, %c0_37] : memref<32x96xbf16, #tpu.memory_space<vmem>>, vector<32x96xbf16>
    %c0_38 = arith.constant 0 : index
    %c0_39 = arith.constant 0 : index
    %227 = vector.load %arg6[%c0_38, %c0_39] : memref<32x96xbf16, #tpu.memory_space<vmem>>, vector<32x96xbf16>
    %c0_40 = arith.constant 0 : index
    %c0_41 = arith.constant 0 : index
    %228 = vector.load %arg7[%c0_40, %c0_41] : memref<1x96xf32, #tpu.memory_space<vmem>>, vector<1x96xf32>
    %c0_42 = arith.constant 0 : index
    %c0_43 = arith.constant 0 : index
    %229 = vector.load %arg8[%c0_42, %c0_43] : memref<1x96xf32, #tpu.memory_space<vmem>>, vector<1x96xf32>
    %230 = vector.extract_strided_slice %229 {offsets = [0, 64], sizes = [1, 32], strides = [1, 1]} : vector<1x96xf32> to vector<1x32xf32>
    %231 = vector.extract_strided_slice %229 {offsets = [0, 0], sizes = [1, 64], strides = [1, 1]} : vector<1x96xf32> to vector<1x64xf32>
    %cst_44 = arith.constant 0.000000e+00 : f32
    %232 = vector.broadcast %cst_44 : f32 to vector<1x32xf32>
    %233 = tpu.concatenate %231, %232 in 1 : vector<1x64xf32>, vector<1x32xf32> -> vector<1x96xf32>
    %234 = arith.addf %228, %233 : vector<1x96xf32>
    %235 = arith.truncf %225 : vector<16x32xf32> to vector<16x32xbf16>
    %cst_45 = arith.constant dense<0.000000e+00> : vector<16x96xf32>
    %236 = tpu.matmul %235, %226, %cst_45 {dimension_numbers = #tpu.dot_dimension_numbers<[1], [0], [0], [1], [0, 0, 1, 1], [], []>} : vector<16x32xbf16>, vector<32x96xbf16>, vector<16x96xf32> -> vector<16x96xf32>
    %237 = vector.broadcast %234 : vector<1x96xf32> to vector<16x96xf32>
    %238 = arith.addf %236, %237 : vector<16x96xf32>
    %239 = vector.shape_cast %238 : vector<16x96xf32> to vector<8x2x96xf32>
    %cst_46 = arith.constant 0.000000e+00 : f32
    %240 = vector.broadcast %cst_46 : f32 to vector<2x32xf32>
    %241 = vector.extract_strided_slice %239 {offsets = [0, 0, 0], sizes = [1, 2, 96], strides = [1, 1, 1]} : vector<8x2x96xf32> to vector<1x2x96xf32>
    %242 = vector.shape_cast %241 : vector<1x2x96xf32> to vector<2x96xf32>
    %243 = arith.truncf %240 : vector<2x32xf32> to vector<2x32xbf16>
    %cst_47 = arith.constant dense<0.000000e+00> : vector<2x96xf32>
    %244 = tpu.matmul %243, %227, %cst_47 {dimension_numbers = #tpu.dot_dimension_numbers<[1], [0], [0], [1], [0, 0, 1, 1], [], []>} : vector<2x32xbf16>, vector<32x96xbf16>, vector<2x96xf32> -> vector<2x96xf32>
    %245 = vector.extract_strided_slice %242 {offsets = [0, 0], sizes = [2, 64], strides = [1, 1]} : vector<2x96xf32> to vector<2x64xf32>
    %246 = vector.extract_strided_slice %244 {offsets = [0, 0], sizes = [2, 64], strides = [1, 1]} : vector<2x96xf32> to vector<2x64xf32>
    %247 = arith.addf %245, %246 : vector<2x64xf32>
    %248 = arith.negf %247 : vector<2x64xf32>
    %249 = math.exp %248 : vector<2x64xf32>
    %cst_48 = arith.constant 1.000000e+00 : f32
    %250 = vector.broadcast %cst_48 : f32 to vector<2x64xf32>
    %251 = arith.addf %250, %249 : vector<2x64xf32>
    %252 = arith.divf %250, %251 : vector<2x64xf32>
    %253 = vector.extract_strided_slice %252 {offsets = [0, 0], sizes = [2, 32], strides = [1, 1]} : vector<2x64xf32> to vector<2x32xf32>
    %254 = vector.extract_strided_slice %252 {offsets = [0, 32], sizes = [2, 32], strides = [1, 1]} : vector<2x64xf32> to vector<2x32xf32>
    %255 = vector.extract_strided_slice %242 {offsets = [0, 64], sizes = [2, 32], strides = [1, 1]} : vector<2x96xf32> to vector<2x32xf32>
    %256 = vector.extract_strided_slice %244 {offsets = [0, 64], sizes = [2, 32], strides = [1, 1]} : vector<2x96xf32> to vector<2x32xf32>
    %257 = vector.broadcast %230 : vector<1x32xf32> to vector<2x32xf32>
    %258 = arith.addf %256, %257 : vector<2x32xf32>
    %259 = arith.mulf %253, %258 : vector<2x32xf32>
    %260 = arith.addf %255, %259 : vector<2x32xf32>
    %261 = math.tanh %260 : vector<2x32xf32>
    %cst_49 = arith.constant 1.000000e+00 : f32
    %262 = vector.broadcast %cst_49 : f32 to vector<2x32xf32>
    %263 = arith.subf %262, %254 : vector<2x32xf32>
    %264 = arith.mulf %263, %261 : vector<2x32xf32>
    %265 = arith.mulf %254, %240 : vector<2x32xf32>
    %266 = arith.addf %264, %265 : vector<2x32xf32>
    %267 = vector.extract_strided_slice %239 {offsets = [1, 0, 0], sizes = [1, 2, 96], strides = [1, 1, 1]} : vector<8x2x96xf32> to vector<1x2x96xf32>
    %268 = vector.shape_cast %267 : vector<1x2x96xf32> to vector<2x96xf32>
    %269 = arith.truncf %266 : vector<2x32xf32> to vector<2x32xbf16>
    %cst_50 = arith.constant dense<0.000000e+00> : vector<2x96xf32>
    %270 = tpu.matmul %269, %227, %cst_50 {dimension_numbers = #tpu.dot_dimension_numbers<[1], [0], [0], [1], [0, 0, 1, 1], [], []>} : vector<2x32xbf16>, vector<32x96xbf16>, vector<2x96xf32> -> vector<2x96xf32>
    %271 = vector.extract_strided_slice %268 {offsets = [0, 0], sizes = [2, 64], strides = [1, 1]} : vector<2x96xf32> to vector<2x64xf32>
    %272 = vector.extract_strided_slice %270 {offsets = [0, 0], sizes = [2, 64], strides = [1, 1]} : vector<2x96xf32> to vector<2x64xf32>
    %273 = arith.addf %271, %272 : vector<2x64xf32>
    %274 = arith.negf %273 : vector<2x64xf32>
    %275 = math.exp %274 : vector<2x64xf32>
    %cst_51 = arith.constant 1.000000e+00 : f32
    %276 = vector.broadcast %cst_51 : f32 to vector<2x64xf32>
    %277 = arith.addf %276, %275 : vector<2x64xf32>
    %278 = arith.divf %276, %277 : vector<2x64xf32>
    %279 = vector.extract_strided_slice %278 {offsets = [0, 0], sizes = [2, 32], strides = [1, 1]} : vector<2x64xf32> to vector<2x32xf32>
    %280 = vector.extract_strided_slice %278 {offsets = [0, 32], sizes = [2, 32], strides = [1, 1]} : vector<2x64xf32> to vector<2x32xf32>
    %281 = vector.extract_strided_slice %268 {offsets = [0, 64], sizes = [2, 32], strides = [1, 1]} : vector<2x96xf32> to vector<2x32xf32>
    %282 = vector.extract_strided_slice %270 {offsets = [0, 64], sizes = [2, 32], strides = [1, 1]} : vector<2x96xf32> to vector<2x32xf32>
    %283 = vector.broadcast %230 : vector<1x32xf32> to vector<2x32xf32>
    %284 = arith.addf %282, %283 : vector<2x32xf32>
    %285 = arith.mulf %279, %284 : vector<2x32xf32>
    %286 = arith.addf %281, %285 : vector<2x32xf32>
    %287 = math.tanh %286 : vector<2x32xf32>
    %cst_52 = arith.constant 1.000000e+00 : f32
    %288 = vector.broadcast %cst_52 : f32 to vector<2x32xf32>
    %289 = arith.subf %288, %280 : vector<2x32xf32>
    %290 = arith.mulf %289, %287 : vector<2x32xf32>
    %291 = arith.mulf %280, %266 : vector<2x32xf32>
    %292 = arith.addf %290, %291 : vector<2x32xf32>
    %293 = vector.extract_strided_slice %239 {offsets = [2, 0, 0], sizes = [1, 2, 96], strides = [1, 1, 1]} : vector<8x2x96xf32> to vector<1x2x96xf32>
    %294 = vector.shape_cast %293 : vector<1x2x96xf32> to vector<2x96xf32>
    %295 = arith.truncf %292 : vector<2x32xf32> to vector<2x32xbf16>
    %cst_53 = arith.constant dense<0.000000e+00> : vector<2x96xf32>
    %296 = tpu.matmul %295, %227, %cst_53 {dimension_numbers = #tpu.dot_dimension_numbers<[1], [0], [0], [1], [0, 0, 1, 1], [], []>} : vector<2x32xbf16>, vector<32x96xbf16>, vector<2x96xf32> -> vector<2x96xf32>
    %297 = vector.extract_strided_slice %294 {offsets = [0, 0], sizes = [2, 64], strides = [1, 1]} : vector<2x96xf32> to vector<2x64xf32>
    %298 = vector.extract_strided_slice %296 {offsets = [0, 0], sizes = [2, 64], strides = [1, 1]} : vector<2x96xf32> to vector<2x64xf32>
    %299 = arith.addf %297, %298 : vector<2x64xf32>
    %300 = arith.negf %299 : vector<2x64xf32>
    %301 = math.exp %300 : vector<2x64xf32>
    %cst_54 = arith.constant 1.000000e+00 : f32
    %302 = vector.broadcast %cst_54 : f32 to vector<2x64xf32>
    %303 = arith.addf %302, %301 : vector<2x64xf32>
    %304 = arith.divf %302, %303 : vector<2x64xf32>
    %305 = vector.extract_strided_slice %304 {offsets = [0, 0], sizes = [2, 32], strides = [1, 1]} : vector<2x64xf32> to vector<2x32xf32>
    %306 = vector.extract_strided_slice %304 {offsets = [0, 32], sizes = [2, 32], strides = [1, 1]} : vector<2x64xf32> to vector<2x32xf32>
    %307 = vector.extract_strided_slice %294 {offsets = [0, 64], sizes = [2, 32], strides = [1, 1]} : vector<2x96xf32> to vector<2x32xf32>
    %308 = vector.extract_strided_slice %296 {offsets = [0, 64], sizes = [2, 32], strides = [1, 1]} : vector<2x96xf32> to vector<2x32xf32>
    %309 = vector.broadcast %230 : vector<1x32xf32> to vector<2x32xf32>
    %310 = arith.addf %308, %309 : vector<2x32xf32>
    %311 = arith.mulf %305, %310 : vector<2x32xf32>
    %312 = arith.addf %307, %311 : vector<2x32xf32>
    %313 = math.tanh %312 : vector<2x32xf32>
    %cst_55 = arith.constant 1.000000e+00 : f32
    %314 = vector.broadcast %cst_55 : f32 to vector<2x32xf32>
    %315 = arith.subf %314, %306 : vector<2x32xf32>
    %316 = arith.mulf %315, %313 : vector<2x32xf32>
    %317 = arith.mulf %306, %292 : vector<2x32xf32>
    %318 = arith.addf %316, %317 : vector<2x32xf32>
    %319 = vector.extract_strided_slice %239 {offsets = [3, 0, 0], sizes = [1, 2, 96], strides = [1, 1, 1]} : vector<8x2x96xf32> to vector<1x2x96xf32>
    %320 = vector.shape_cast %319 : vector<1x2x96xf32> to vector<2x96xf32>
    %321 = arith.truncf %318 : vector<2x32xf32> to vector<2x32xbf16>
    %cst_56 = arith.constant dense<0.000000e+00> : vector<2x96xf32>
    %322 = tpu.matmul %321, %227, %cst_56 {dimension_numbers = #tpu.dot_dimension_numbers<[1], [0], [0], [1], [0, 0, 1, 1], [], []>} : vector<2x32xbf16>, vector<32x96xbf16>, vector<2x96xf32> -> vector<2x96xf32>
    %323 = vector.extract_strided_slice %320 {offsets = [0, 0], sizes = [2, 64], strides = [1, 1]} : vector<2x96xf32> to vector<2x64xf32>
    %324 = vector.extract_strided_slice %322 {offsets = [0, 0], sizes = [2, 64], strides = [1, 1]} : vector<2x96xf32> to vector<2x64xf32>
    %325 = arith.addf %323, %324 : vector<2x64xf32>
    %326 = arith.negf %325 : vector<2x64xf32>
    %327 = math.exp %326 : vector<2x64xf32>
    %cst_57 = arith.constant 1.000000e+00 : f32
    %328 = vector.broadcast %cst_57 : f32 to vector<2x64xf32>
    %329 = arith.addf %328, %327 : vector<2x64xf32>
    %330 = arith.divf %328, %329 : vector<2x64xf32>
    %331 = vector.extract_strided_slice %330 {offsets = [0, 0], sizes = [2, 32], strides = [1, 1]} : vector<2x64xf32> to vector<2x32xf32>
    %332 = vector.extract_strided_slice %330 {offsets = [0, 32], sizes = [2, 32], strides = [1, 1]} : vector<2x64xf32> to vector<2x32xf32>
    %333 = vector.extract_strided_slice %320 {offsets = [0, 64], sizes = [2, 32], strides = [1, 1]} : vector<2x96xf32> to vector<2x32xf32>
    %334 = vector.extract_strided_slice %322 {offsets = [0, 64], sizes = [2, 32], strides = [1, 1]} : vector<2x96xf32> to vector<2x32xf32>
    %335 = vector.broadcast %230 : vector<1x32xf32> to vector<2x32xf32>
    %336 = arith.addf %334, %335 : vector<2x32xf32>
    %337 = arith.mulf %331, %336 : vector<2x32xf32>
    %338 = arith.addf %333, %337 : vector<2x32xf32>
    %339 = math.tanh %338 : vector<2x32xf32>
    %cst_58 = arith.constant 1.000000e+00 : f32
    %340 = vector.broadcast %cst_58 : f32 to vector<2x32xf32>
    %341 = arith.subf %340, %332 : vector<2x32xf32>
    %342 = arith.mulf %341, %339 : vector<2x32xf32>
    %343 = arith.mulf %332, %318 : vector<2x32xf32>
    %344 = arith.addf %342, %343 : vector<2x32xf32>
    %345 = vector.extract_strided_slice %239 {offsets = [4, 0, 0], sizes = [1, 2, 96], strides = [1, 1, 1]} : vector<8x2x96xf32> to vector<1x2x96xf32>
    %346 = vector.shape_cast %345 : vector<1x2x96xf32> to vector<2x96xf32>
    %347 = arith.truncf %344 : vector<2x32xf32> to vector<2x32xbf16>
    %cst_59 = arith.constant dense<0.000000e+00> : vector<2x96xf32>
    %348 = tpu.matmul %347, %227, %cst_59 {dimension_numbers = #tpu.dot_dimension_numbers<[1], [0], [0], [1], [0, 0, 1, 1], [], []>} : vector<2x32xbf16>, vector<32x96xbf16>, vector<2x96xf32> -> vector<2x96xf32>
    %349 = vector.extract_strided_slice %346 {offsets = [0, 0], sizes = [2, 64], strides = [1, 1]} : vector<2x96xf32> to vector<2x64xf32>
    %350 = vector.extract_strided_slice %348 {offsets = [0, 0], sizes = [2, 64], strides = [1, 1]} : vector<2x96xf32> to vector<2x64xf32>
    %351 = arith.addf %349, %350 : vector<2x64xf32>
    %352 = arith.negf %351 : vector<2x64xf32>
    %353 = math.exp %352 : vector<2x64xf32>
    %cst_60 = arith.constant 1.000000e+00 : f32
    %354 = vector.broadcast %cst_60 : f32 to vector<2x64xf32>
    %355 = arith.addf %354, %353 : vector<2x64xf32>
    %356 = arith.divf %354, %355 : vector<2x64xf32>
    %357 = vector.extract_strided_slice %356 {offsets = [0, 0], sizes = [2, 32], strides = [1, 1]} : vector<2x64xf32> to vector<2x32xf32>
    %358 = vector.extract_strided_slice %356 {offsets = [0, 32], sizes = [2, 32], strides = [1, 1]} : vector<2x64xf32> to vector<2x32xf32>
    %359 = vector.extract_strided_slice %346 {offsets = [0, 64], sizes = [2, 32], strides = [1, 1]} : vector<2x96xf32> to vector<2x32xf32>
    %360 = vector.extract_strided_slice %348 {offsets = [0, 64], sizes = [2, 32], strides = [1, 1]} : vector<2x96xf32> to vector<2x32xf32>
    %361 = vector.broadcast %230 : vector<1x32xf32> to vector<2x32xf32>
    %362 = arith.addf %360, %361 : vector<2x32xf32>
    %363 = arith.mulf %357, %362 : vector<2x32xf32>
    %364 = arith.addf %359, %363 : vector<2x32xf32>
    %365 = math.tanh %364 : vector<2x32xf32>
    %cst_61 = arith.constant 1.000000e+00 : f32
    %366 = vector.broadcast %cst_61 : f32 to vector<2x32xf32>
    %367 = arith.subf %366, %358 : vector<2x32xf32>
    %368 = arith.mulf %367, %365 : vector<2x32xf32>
    %369 = arith.mulf %358, %344 : vector<2x32xf32>
    %370 = arith.addf %368, %369 : vector<2x32xf32>
    %371 = vector.extract_strided_slice %239 {offsets = [5, 0, 0], sizes = [1, 2, 96], strides = [1, 1, 1]} : vector<8x2x96xf32> to vector<1x2x96xf32>
    %372 = vector.shape_cast %371 : vector<1x2x96xf32> to vector<2x96xf32>
    %373 = arith.truncf %370 : vector<2x32xf32> to vector<2x32xbf16>
    %cst_62 = arith.constant dense<0.000000e+00> : vector<2x96xf32>
    %374 = tpu.matmul %373, %227, %cst_62 {dimension_numbers = #tpu.dot_dimension_numbers<[1], [0], [0], [1], [0, 0, 1, 1], [], []>} : vector<2x32xbf16>, vector<32x96xbf16>, vector<2x96xf32> -> vector<2x96xf32>
    %375 = vector.extract_strided_slice %372 {offsets = [0, 0], sizes = [2, 64], strides = [1, 1]} : vector<2x96xf32> to vector<2x64xf32>
    %376 = vector.extract_strided_slice %374 {offsets = [0, 0], sizes = [2, 64], strides = [1, 1]} : vector<2x96xf32> to vector<2x64xf32>
    %377 = arith.addf %375, %376 : vector<2x64xf32>
    %378 = arith.negf %377 : vector<2x64xf32>
    %379 = math.exp %378 : vector<2x64xf32>
    %cst_63 = arith.constant 1.000000e+00 : f32
    %380 = vector.broadcast %cst_63 : f32 to vector<2x64xf32>
    %381 = arith.addf %380, %379 : vector<2x64xf32>
    %382 = arith.divf %380, %381 : vector<2x64xf32>
    %383 = vector.extract_strided_slice %382 {offsets = [0, 0], sizes = [2, 32], strides = [1, 1]} : vector<2x64xf32> to vector<2x32xf32>
    %384 = vector.extract_strided_slice %382 {offsets = [0, 32], sizes = [2, 32], strides = [1, 1]} : vector<2x64xf32> to vector<2x32xf32>
    %385 = vector.extract_strided_slice %372 {offsets = [0, 64], sizes = [2, 32], strides = [1, 1]} : vector<2x96xf32> to vector<2x32xf32>
    %386 = vector.extract_strided_slice %374 {offsets = [0, 64], sizes = [2, 32], strides = [1, 1]} : vector<2x96xf32> to vector<2x32xf32>
    %387 = vector.broadcast %230 : vector<1x32xf32> to vector<2x32xf32>
    %388 = arith.addf %386, %387 : vector<2x32xf32>
    %389 = arith.mulf %383, %388 : vector<2x32xf32>
    %390 = arith.addf %385, %389 : vector<2x32xf32>
    %391 = math.tanh %390 : vector<2x32xf32>
    %cst_64 = arith.constant 1.000000e+00 : f32
    %392 = vector.broadcast %cst_64 : f32 to vector<2x32xf32>
    %393 = arith.subf %392, %384 : vector<2x32xf32>
    %394 = arith.mulf %393, %391 : vector<2x32xf32>
    %395 = arith.mulf %384, %370 : vector<2x32xf32>
    %396 = arith.addf %394, %395 : vector<2x32xf32>
    %397 = vector.extract_strided_slice %239 {offsets = [6, 0, 0], sizes = [1, 2, 96], strides = [1, 1, 1]} : vector<8x2x96xf32> to vector<1x2x96xf32>
    %398 = vector.shape_cast %397 : vector<1x2x96xf32> to vector<2x96xf32>
    %399 = arith.truncf %396 : vector<2x32xf32> to vector<2x32xbf16>
    %cst_65 = arith.constant dense<0.000000e+00> : vector<2x96xf32>
    %400 = tpu.matmul %399, %227, %cst_65 {dimension_numbers = #tpu.dot_dimension_numbers<[1], [0], [0], [1], [0, 0, 1, 1], [], []>} : vector<2x32xbf16>, vector<32x96xbf16>, vector<2x96xf32> -> vector<2x96xf32>
    %401 = vector.extract_strided_slice %398 {offsets = [0, 0], sizes = [2, 64], strides = [1, 1]} : vector<2x96xf32> to vector<2x64xf32>
    %402 = vector.extract_strided_slice %400 {offsets = [0, 0], sizes = [2, 64], strides = [1, 1]} : vector<2x96xf32> to vector<2x64xf32>
    %403 = arith.addf %401, %402 : vector<2x64xf32>
    %404 = arith.negf %403 : vector<2x64xf32>
    %405 = math.exp %404 : vector<2x64xf32>
    %cst_66 = arith.constant 1.000000e+00 : f32
    %406 = vector.broadcast %cst_66 : f32 to vector<2x64xf32>
    %407 = arith.addf %406, %405 : vector<2x64xf32>
    %408 = arith.divf %406, %407 : vector<2x64xf32>
    %409 = vector.extract_strided_slice %408 {offsets = [0, 0], sizes = [2, 32], strides = [1, 1]} : vector<2x64xf32> to vector<2x32xf32>
    %410 = vector.extract_strided_slice %408 {offsets = [0, 32], sizes = [2, 32], strides = [1, 1]} : vector<2x64xf32> to vector<2x32xf32>
    %411 = vector.extract_strided_slice %398 {offsets = [0, 64], sizes = [2, 32], strides = [1, 1]} : vector<2x96xf32> to vector<2x32xf32>
    %412 = vector.extract_strided_slice %400 {offsets = [0, 64], sizes = [2, 32], strides = [1, 1]} : vector<2x96xf32> to vector<2x32xf32>
    %413 = vector.broadcast %230 : vector<1x32xf32> to vector<2x32xf32>
    %414 = arith.addf %412, %413 : vector<2x32xf32>
    %415 = arith.mulf %409, %414 : vector<2x32xf32>
    %416 = arith.addf %411, %415 : vector<2x32xf32>
    %417 = math.tanh %416 : vector<2x32xf32>
    %cst_67 = arith.constant 1.000000e+00 : f32
    %418 = vector.broadcast %cst_67 : f32 to vector<2x32xf32>
    %419 = arith.subf %418, %410 : vector<2x32xf32>
    %420 = arith.mulf %419, %417 : vector<2x32xf32>
    %421 = arith.mulf %410, %396 : vector<2x32xf32>
    %422 = arith.addf %420, %421 : vector<2x32xf32>
    %423 = vector.extract_strided_slice %239 {offsets = [7, 0, 0], sizes = [1, 2, 96], strides = [1, 1, 1]} : vector<8x2x96xf32> to vector<1x2x96xf32>
    %424 = vector.shape_cast %423 : vector<1x2x96xf32> to vector<2x96xf32>
    %425 = arith.truncf %422 : vector<2x32xf32> to vector<2x32xbf16>
    %cst_68 = arith.constant dense<0.000000e+00> : vector<2x96xf32>
    %426 = tpu.matmul %425, %227, %cst_68 {dimension_numbers = #tpu.dot_dimension_numbers<[1], [0], [0], [1], [0, 0, 1, 1], [], []>} : vector<2x32xbf16>, vector<32x96xbf16>, vector<2x96xf32> -> vector<2x96xf32>
    %427 = vector.extract_strided_slice %424 {offsets = [0, 0], sizes = [2, 64], strides = [1, 1]} : vector<2x96xf32> to vector<2x64xf32>
    %428 = vector.extract_strided_slice %426 {offsets = [0, 0], sizes = [2, 64], strides = [1, 1]} : vector<2x96xf32> to vector<2x64xf32>
    %429 = arith.addf %427, %428 : vector<2x64xf32>
    %430 = arith.negf %429 : vector<2x64xf32>
    %431 = math.exp %430 : vector<2x64xf32>
    %cst_69 = arith.constant 1.000000e+00 : f32
    %432 = vector.broadcast %cst_69 : f32 to vector<2x64xf32>
    %433 = arith.addf %432, %431 : vector<2x64xf32>
    %434 = arith.divf %432, %433 : vector<2x64xf32>
    %435 = vector.extract_strided_slice %434 {offsets = [0, 0], sizes = [2, 32], strides = [1, 1]} : vector<2x64xf32> to vector<2x32xf32>
    %436 = vector.extract_strided_slice %434 {offsets = [0, 32], sizes = [2, 32], strides = [1, 1]} : vector<2x64xf32> to vector<2x32xf32>
    %437 = vector.extract_strided_slice %424 {offsets = [0, 64], sizes = [2, 32], strides = [1, 1]} : vector<2x96xf32> to vector<2x32xf32>
    %438 = vector.extract_strided_slice %426 {offsets = [0, 64], sizes = [2, 32], strides = [1, 1]} : vector<2x96xf32> to vector<2x32xf32>
    %439 = vector.broadcast %230 : vector<1x32xf32> to vector<2x32xf32>
    %440 = arith.addf %438, %439 : vector<2x32xf32>
    %441 = arith.mulf %435, %440 : vector<2x32xf32>
    %442 = arith.addf %437, %441 : vector<2x32xf32>
    %443 = math.tanh %442 : vector<2x32xf32>
    %cst_70 = arith.constant 1.000000e+00 : f32
    %444 = vector.broadcast %cst_70 : f32 to vector<2x32xf32>
    %445 = arith.subf %444, %436 : vector<2x32xf32>
    %446 = arith.mulf %445, %443 : vector<2x32xf32>
    %447 = arith.mulf %436, %422 : vector<2x32xf32>
    %448 = arith.addf %446, %447 : vector<2x32xf32>
    %449 = tpu.concatenate %224, %448 in 1 : vector<2x32xf32>, vector<2x32xf32> -> vector<2x64xf32>
    %450 = arith.truncf %449 : vector<2x64xf32> to vector<2x64xbf16>
    %c0_71 = arith.constant 0 : index
    %c0_72 = arith.constant 0 : index
    %451 = vector.load %arg9[%c0_71, %c0_72] : memref<64x128xbf16, #tpu.memory_space<vmem>>, vector<64x128xbf16>
    %cst_73 = arith.constant dense<0.000000e+00> : vector<2x128xf32>
    %452 = tpu.matmul %450, %451, %cst_73 {dimension_numbers = #tpu.dot_dimension_numbers<[1], [0], [0], [1], [0, 0, 1, 1], [], []>} : vector<2x64xbf16>, vector<64x128xbf16>, vector<2x128xf32> -> vector<2x128xf32>
    %c0_74 = arith.constant 0 : index
    %c0_75 = arith.constant 0 : index
    %453 = vector.load %arg10[%c0_74, %c0_75] : memref<1x128xf32, #tpu.memory_space<vmem>>, vector<1x128xf32>
    %454 = vector.broadcast %453 : vector<1x128xf32> to vector<2x128xf32>
    %455 = arith.addf %452, %454 : vector<2x128xf32>
    %456 = arith.negf %455 : vector<2x128xf32>
    %457 = math.exp %456 : vector<2x128xf32>
    %cst_76 = arith.constant 1.000000e+00 : f32
    %458 = vector.broadcast %cst_76 : f32 to vector<2x128xf32>
    %459 = arith.addf %458, %457 : vector<2x128xf32>
    %460 = arith.divf %458, %459 : vector<2x128xf32>
    %461 = arith.mulf %455, %460 : vector<2x128xf32>
    %462 = arith.truncf %461 : vector<2x128xf32> to vector<2x128xbf16>
    %c0_77 = arith.constant 0 : index
    %c0_78 = arith.constant 0 : index
    %c0_79 = arith.constant 0 : index
    %463 = vector.load %arg11[%c0_77, %c0_78, %c0_79] : memref<5x128x128xbf16, #tpu.memory_space<vmem>>, vector<1x128x128xbf16>
    %464 = vector.shape_cast %463 : vector<1x128x128xbf16> to vector<128x128xbf16>
    %cst_80 = arith.constant dense<0.000000e+00> : vector<2x128xf32>
    %465 = tpu.matmul %462, %464, %cst_80 {dimension_numbers = #tpu.dot_dimension_numbers<[1], [0], [0], [1], [0, 0, 1, 1], [], []>} : vector<2x128xbf16>, vector<128x128xbf16>, vector<2x128xf32> -> vector<2x128xf32>
    %c0_81 = arith.constant 0 : index
    %c0_82 = arith.constant 0 : index
    %c0_83 = arith.constant 0 : index
    %466 = vector.load %arg12[%c0_81, %c0_82, %c0_83] : memref<5x1x128xf32, #tpu.memory_space<vmem>>, vector<1x1x128xf32>
    %467 = vector.shape_cast %466 : vector<1x1x128xf32> to vector<1x128xf32>
    %468 = vector.broadcast %467 : vector<1x128xf32> to vector<2x128xf32>
    %469 = arith.addf %465, %468 : vector<2x128xf32>
    %470 = arith.negf %469 : vector<2x128xf32>
    %471 = math.exp %470 : vector<2x128xf32>
    %cst_84 = arith.constant 1.000000e+00 : f32
    %472 = vector.broadcast %cst_84 : f32 to vector<2x128xf32>
    %473 = arith.addf %472, %471 : vector<2x128xf32>
    %474 = arith.divf %472, %473 : vector<2x128xf32>
    %475 = arith.mulf %469, %474 : vector<2x128xf32>
    %476 = arith.truncf %475 : vector<2x128xf32> to vector<2x128xbf16>
    %c1 = arith.constant 1 : index
    %c0_85 = arith.constant 0 : index
    %c0_86 = arith.constant 0 : index
    %477 = vector.load %arg11[%c1, %c0_85, %c0_86] : memref<5x128x128xbf16, #tpu.memory_space<vmem>>, vector<1x128x128xbf16>
    %478 = vector.shape_cast %477 : vector<1x128x128xbf16> to vector<128x128xbf16>
    %cst_87 = arith.constant dense<0.000000e+00> : vector<2x128xf32>
    %479 = tpu.matmul %476, %478, %cst_87 {dimension_numbers = #tpu.dot_dimension_numbers<[1], [0], [0], [1], [0, 0, 1, 1], [], []>} : vector<2x128xbf16>, vector<128x128xbf16>, vector<2x128xf32> -> vector<2x128xf32>
    %c1_88 = arith.constant 1 : index
    %c0_89 = arith.constant 0 : index
    %c0_90 = arith.constant 0 : index
    %480 = vector.load %arg12[%c1_88, %c0_89, %c0_90] : memref<5x1x128xf32, #tpu.memory_space<vmem>>, vector<1x1x128xf32>
    %481 = vector.shape_cast %480 : vector<1x1x128xf32> to vector<1x128xf32>
    %482 = vector.broadcast %481 : vector<1x128xf32> to vector<2x128xf32>
    %483 = arith.addf %479, %482 : vector<2x128xf32>
    %484 = arith.negf %483 : vector<2x128xf32>
    %485 = math.exp %484 : vector<2x128xf32>
    %cst_91 = arith.constant 1.000000e+00 : f32
    %486 = vector.broadcast %cst_91 : f32 to vector<2x128xf32>
    %487 = arith.addf %486, %485 : vector<2x128xf32>
    %488 = arith.divf %486, %487 : vector<2x128xf32>
    %489 = arith.mulf %483, %488 : vector<2x128xf32>
    %490 = arith.truncf %489 : vector<2x128xf32> to vector<2x128xbf16>
    %c2 = arith.constant 2 : index
    %c0_92 = arith.constant 0 : index
    %c0_93 = arith.constant 0 : index
    %491 = vector.load %arg11[%c2, %c0_92, %c0_93] : memref<5x128x128xbf16, #tpu.memory_space<vmem>>, vector<1x128x128xbf16>
    %492 = vector.shape_cast %491 : vector<1x128x128xbf16> to vector<128x128xbf16>
    %cst_94 = arith.constant dense<0.000000e+00> : vector<2x128xf32>
    %493 = tpu.matmul %490, %492, %cst_94 {dimension_numbers = #tpu.dot_dimension_numbers<[1], [0], [0], [1], [0, 0, 1, 1], [], []>} : vector<2x128xbf16>, vector<128x128xbf16>, vector<2x128xf32> -> vector<2x128xf32>
    %c2_95 = arith.constant 2 : index
    %c0_96 = arith.constant 0 : index
    %c0_97 = arith.constant 0 : index
    %494 = vector.load %arg12[%c2_95, %c0_96, %c0_97] : memref<5x1x128xf32, #tpu.memory_space<vmem>>, vector<1x1x128xf32>
    %495 = vector.shape_cast %494 : vector<1x1x128xf32> to vector<1x128xf32>
    %496 = vector.broadcast %495 : vector<1x128xf32> to vector<2x128xf32>
    %497 = arith.addf %493, %496 : vector<2x128xf32>
    %498 = arith.negf %497 : vector<2x128xf32>
    %499 = math.exp %498 : vector<2x128xf32>
    %cst_98 = arith.constant 1.000000e+00 : f32
    %500 = vector.broadcast %cst_98 : f32 to vector<2x128xf32>
    %501 = arith.addf %500, %499 : vector<2x128xf32>
    %502 = arith.divf %500, %501 : vector<2x128xf32>
    %503 = arith.mulf %497, %502 : vector<2x128xf32>
    %504 = arith.truncf %503 : vector<2x128xf32> to vector<2x128xbf16>
    %c3 = arith.constant 3 : index
    %c0_99 = arith.constant 0 : index
    %c0_100 = arith.constant 0 : index
    %505 = vector.load %arg11[%c3, %c0_99, %c0_100] : memref<5x128x128xbf16, #tpu.memory_space<vmem>>, vector<1x128x128xbf16>
    %506 = vector.shape_cast %505 : vector<1x128x128xbf16> to vector<128x128xbf16>
    %cst_101 = arith.constant dense<0.000000e+00> : vector<2x128xf32>
    %507 = tpu.matmul %504, %506, %cst_101 {dimension_numbers = #tpu.dot_dimension_numbers<[1], [0], [0], [1], [0, 0, 1, 1], [], []>} : vector<2x128xbf16>, vector<128x128xbf16>, vector<2x128xf32> -> vector<2x128xf32>
    %c3_102 = arith.constant 3 : index
    %c0_103 = arith.constant 0 : index
    %c0_104 = arith.constant 0 : index
    %508 = vector.load %arg12[%c3_102, %c0_103, %c0_104] : memref<5x1x128xf32, #tpu.memory_space<vmem>>, vector<1x1x128xf32>
    %509 = vector.shape_cast %508 : vector<1x1x128xf32> to vector<1x128xf32>
    %510 = vector.broadcast %509 : vector<1x128xf32> to vector<2x128xf32>
    %511 = arith.addf %507, %510 : vector<2x128xf32>
    %512 = arith.negf %511 : vector<2x128xf32>
    %513 = math.exp %512 : vector<2x128xf32>
    %cst_105 = arith.constant 1.000000e+00 : f32
    %514 = vector.broadcast %cst_105 : f32 to vector<2x128xf32>
    %515 = arith.addf %514, %513 : vector<2x128xf32>
    %516 = arith.divf %514, %515 : vector<2x128xf32>
    %517 = arith.mulf %511, %516 : vector<2x128xf32>
    %518 = arith.truncf %517 : vector<2x128xf32> to vector<2x128xbf16>
    %c4 = arith.constant 4 : index
    %c0_106 = arith.constant 0 : index
    %c0_107 = arith.constant 0 : index
    %519 = vector.load %arg11[%c4, %c0_106, %c0_107] : memref<5x128x128xbf16, #tpu.memory_space<vmem>>, vector<1x128x128xbf16>
    %520 = vector.shape_cast %519 : vector<1x128x128xbf16> to vector<128x128xbf16>
    %cst_108 = arith.constant dense<0.000000e+00> : vector<2x128xf32>
    %521 = tpu.matmul %518, %520, %cst_108 {dimension_numbers = #tpu.dot_dimension_numbers<[1], [0], [0], [1], [0, 0, 1, 1], [], []>} : vector<2x128xbf16>, vector<128x128xbf16>, vector<2x128xf32> -> vector<2x128xf32>
    %c4_109 = arith.constant 4 : index
    %c0_110 = arith.constant 0 : index
    %c0_111 = arith.constant 0 : index
    %522 = vector.load %arg12[%c4_109, %c0_110, %c0_111] : memref<5x1x128xf32, #tpu.memory_space<vmem>>, vector<1x1x128xf32>
    %523 = vector.shape_cast %522 : vector<1x1x128xf32> to vector<1x128xf32>
    %524 = vector.broadcast %523 : vector<1x128xf32> to vector<2x128xf32>
    %525 = arith.addf %521, %524 : vector<2x128xf32>
    %526 = arith.negf %525 : vector<2x128xf32>
    %527 = math.exp %526 : vector<2x128xf32>
    %cst_112 = arith.constant 1.000000e+00 : f32
    %528 = vector.broadcast %cst_112 : f32 to vector<2x128xf32>
    %529 = arith.addf %528, %527 : vector<2x128xf32>
    %530 = arith.divf %528, %529 : vector<2x128xf32>
    %531 = arith.mulf %525, %530 : vector<2x128xf32>
    %532 = arith.truncf %531 : vector<2x128xf32> to vector<2x128xbf16>
    %c0_113 = arith.constant 0 : index
    %c0_114 = arith.constant 0 : index
    %533 = vector.load %arg13[%c0_113, %c0_114] : memref<128x128xbf16, #tpu.memory_space<vmem>>, vector<128x128xbf16>
    %cst_115 = arith.constant dense<0.000000e+00> : vector<2x128xf32>
    %534 = tpu.matmul %532, %533, %cst_115 {dimension_numbers = #tpu.dot_dimension_numbers<[1], [0], [0], [1], [0, 0, 1, 1], [], []>} : vector<2x128xbf16>, vector<128x128xbf16>, vector<2x128xf32> -> vector<2x128xf32>
    %c0_116 = arith.constant 0 : index
    %c0_117 = arith.constant 0 : index
    %535 = vector.load %arg14[%c0_116, %c0_117] : memref<1x128xf32, #tpu.memory_space<vmem>>, vector<1x128xf32>
    %536 = vector.broadcast %535 : vector<1x128xf32> to vector<2x128xf32>
    %537 = arith.addf %534, %536 : vector<2x128xf32>
    %c0_118 = arith.constant 0 : index
    %c0_119 = arith.constant 0 : index
    %538 = vector.load %arg15[%c0_118, %c0_119] : memref<2x128xf32, #tpu.memory_space<vmem>>, vector<2x128xf32>
    tpu.vector_store %arg15[%c0_118, %c0_119], %537 {strides = array<i32>} : memref<2x128xf32, #tpu.memory_space<vmem>>, vector<2x128xf32>,
    return
  }
}

</mosaic_0001>

<bundles_post_ra>
// kernel: gru_pred_forward.1
= control target key start
LH: loop header
LB: loop body
LE: loop exit
PB: predicated region body
PF: predicated region fallthrough
CT: control target
= control target key end

     0   :  { %vm125_vm0 = vcmask 1043456   ;;  %v83_v1 = vlaneseq  ;;  %v3326_v2 = vmov 0.0   ;;  %vm3327_vm1 = vmmov 0   ;;  %s4051_s0 = inlined_call_operand.vmem [shape: f32[8,2,8], index: 0, kind: input, shape index: {}]   ;;  %s4052_s1 = inlined_call_operand.vmem [shape: bf16[8,96], index: 1, kind: input, shape index: {}]   ;;  %s4053_s2 = inlined_call_operand.vmem [shape: bf16[32,96], index: 2, kind: input, shape index: {}]   ;;  %s4054_s3 = inlined_call_operand.vmem [shape: f32[1,96], index: 3, kind: input, shape index: {}]   ;;  %s4055_s4 = inlined_call_operand.vmem [shape: f32[1,96], index: 4, kind: input, shape index: {}]   ;;  %s4056_s5 = inlined_call_operand.vmem [shape: bf16[32,96], index: 5, kind: input, shape index: {}]   ;;  %s4057_s6 = inlined_call_operand.vmem [shape: bf16[32,96], index: 6, kind: input, shape index: {}]   ;;  %s4058_s7 = inlined_call_operand.vmem [shape: f32[1,96], index: 7, kind: input, shape index: {}]   ;;  %s4059_s8 = inlined_call_operand.vmem [shape: f32[1,96], index: 8, kind: input, shape index: {}]   ;;  %s4060_s9 = inlined_call_operand.vmem [shape: bf16[64,128], index: 9, kind: input, shape index: {}]   ;;  %s4061_s10 = inlined_call_operand.vmem [shape: f32[1,128], index: 10, kind: input, shape index: {}]   ;;  %s4062_s11 = inlined_call_operand.vmem [shape: bf16[5,128,128], index: 11, kind: input, shape index: {}]   ;;  %s4063_s12 = inlined_call_operand.vmem [shape: f32[5,1,128], index: 12, kind: input, shape index: {}]   ;;  %s4064_s13 = inlined_call_operand.vmem [shape: bf16[128,128], index: 13, kind: input, shape index: {}]   ;;  %s4065_s14 = inlined_call_operand.vmem [shape: f32[1,128], index: 14, kind: input, shape index: {}]   ;;  %s4066_s15 = inlined_call_operand.hbm [shape: f32[2,128], index: 15, kind: output, shape index: {}]  }
   0x1   :  { %v60_v0 = vld [vmem:[%s4052_s1] sm:$0xf]  ;;  %2843 = vmatprep.subr.bf16.mxu1 %v3326_v2  ;;  %2845 = vmatprep.mubr.msk.bf16.mxu1 %vm3327_vm1, %v3326_v2  ;;  %v54_v7 = vld [vmem:[%s4051_s0 + $0x4] sm:$0x3]  ;;  %v55_v8 = vld [vmem:[%s4051_s0 + $0x6] sm:$0x3] }
   0x2   :  { %v127_v3 = vsel %vm125_vm0, %v60_v0, 0  ;;  %v52_v4 = vld [vmem:[%s4051_s0] sm:$0x3]  ;;  %v53_v5 = vld [vmem:[%s4051_s0 + $0x2] sm:$0x3]  ;;  %2857 = vmatprep.subr.bf16.mxu0 %v3326_v2  ;;  %v84_v13 = vshrl.u32 %v83_v1, 7  ;;  %2861 = vmatprep.mubr.msk.bf16.mxu0 %vm3327_vm1, %v3326_v2  ;;  %v79_v18 = vcombine.low %v54_v7, %v55_v8 }
   0x3   :  { %v3429_v6 = vld [vmem:[%s4053_s2] sm:$0xff]   ;;  %2844 = vmatpush3.bf16.msra.mxu1 %v127_v3  ;;  %v56_v9 = vld [vmem:[%s4051_s0 + $0x8] sm:$0x3]  ;;  %v57_v10 = vld [vmem:[%s4051_s0 + $0xa] sm:$0x3]  ;;  %v78_v17 = vcombine.low %v52_v4, %v53_v5  ;;  %vm121_vm2 = vcmask 64512  }
   0x4   :  { %2849 = vmatprep.subr.bf16.mxu1 %v3326_v2  ;;  %v58_v11 = vld [vmem:[%s4051_s0 + $0xc] sm:$0x3]  ;;  %v59_v12 = vld [vmem:[%s4051_s0 + $0xe] sm:$0x3]  ;;  %2858 = vmatpush3.bf16.msra.mxu0 %v3429_v6  ;;  %v3328_v15 = vmov 1983009808   ;;  %v95_v20 = vcombine.low %v56_v9, %v57_v10 }
   0x5   :  { %v3455_v14 = vld [vmem:[%s4053_s2 + $0x8] sm:$0xff]   ;;  %2859 = vmatprep.subr.bf16.mxu0 %v3326_v2  ;;  %v81_v16 = vunpack.c.l.s4 %v3328_v15  ;;  %v96_v21 = vcombine.low %v58_v11, %v59_v12  ;;  %v3329_v30 = vmov 0  }
   0x7   :  { %v82_v19 = vunpack.c.0.s8 %v81_v16 }
   0x8   :  { %2860 = vmatpush3.bf16.msra.mxu0 %v3455_v14 }
   0x9   :  { %2873 = vmatprep.subr.bf16.mxu0 %v3326_v2  ;;  %v3462_v22 = vsub.s32 %v82_v19, %v84_v13 }
   0xb   :  { %v86_v23 = vrot.slane %v78_v17, %v3462_v22  ;;  %v93_v24 = vrot.slane %v79_v18, %v3462_v22  ;;  %v103_v25 = vrot.slane %v95_v20, %v3462_v22  ;;  %v110_v26 = vrot.slane %v96_v21, %v3462_v22 }
   0xd   :  { %v94_v27 = vcombine.low %v86_v23, %v93_v24  ;;  %v111_v28 = vcombine.low %v103_v25, %v110_v26 }
   0xf   :  { %v114_v29 = vpack.c.bf16 %v111_v28, %v94_v27 }
  0x11   :  { %2846 = vmatmul.mubr.msk.bf16.vlgmr.msra.gmra.mrb[0].mxu1 %vm121_vm2, %v114_v29 }
  0x12   :  { %2850 = vmatpush3.bf16.msra.mxu1 %v3429_v6  ;;  %2853 = vmatprep.mubr.msk.bf16.mxu1 %vm3327_vm1, %v3326_v2 }
  0x13   :  { %2851 = vmatprep.subr.bf16.mxu1 %v3326_v2 }
  0x16   :  { %2852 = vmatpush3.bf16.msra.mxu1 %v3455_v14 }
  0x17   :  { %2865 = vmatprep.subr.bf16.mxu1 %v3326_v2 }
  0x19   :  { %2854 = vmatmul.mubr.bf16.vlgmr.msra.gmra.mrb[4].mxu1 %v3329_v30 }
  0x1a   :  { %2866 = vmatpush3.bf16.msra.mxu1 %v3429_v6  ;;  %2869 = vmatprep.mubr.msk.bf16.mxu1 %vm3327_vm1, %v3326_v2 }
  0x1b   :  { %2867 = vmatprep.subr.bf16.mxu1 %v3326_v2 }
  0x1e   :  { %2868 = vmatpush3.bf16.msra.mxu1 %v3455_v14 }
  0x1f   :  { %2881 = vmatprep.subr.bf16.mxu1 %v3326_v2 }
  0x20   :  { %20 = vsyncpa [#allocation3], 0  ;;  %v66_v31 = vld [vmem:[%s4055_s4] sm:$0x1]  ;;  %vm67_vm3 = vcmask 523264   ;;  %v3488_v35 = vsub.s32 0, %v84_v13 }
  0x21   :  { %v65_v32 = vld [vmem:[%s4054_s3] sm:$0x1]  ;;  %v68_v33 = vsel %vm67_vm3, %v66_v31, 0.0  ;;  %s3330_s3 = smov 64   ;;  %s3331_s4 = smov 96   ;;  %vm226_vm4 = vcmask 261120  }
  0x22   :  { %v69_v34 = vadd.f32 %v68_v33, %v65_v32  ;;  %v3494_v42 = vrot.slane %v66_v31, %v3488_v35  ;;  %vm946_vm5 = vcmask 1041408   ;;  %vm949_vm6 = vcmask 1045504  }
  0x24   :  { %v119_v37 = vrot.slane %v69_v34, %v3488_v35 }
  0xe4   :  { %v163_v36 = vpop.f32.mrb[0].mxu1 }
  0xe5   :  { %v2847_v38 = vpop.f32.mrb[1].mxu1  ;;  %v3499_v49 = vadd.f32 %v163_v36, %v119_v37 }
  0xe6   :  { %v166_v39 = vpop.f32.mrb[2].mxu1 }
  0xe7   :  { %v3491_v40 = vadd.f32 %v166_v39, %v119_v37  ;;  %v2848_v41 = vpop.f32.mrb[3].mxu1  ;;  %v179_v50 = vrot.slane %v3499_v49, %v3462_v22 }
  0xe8   :  { %v172_v41 = vcombine.high %v3499_v49, %v3499_v49 }
  0xe9   :  { %v187_v12 = vcombine.high %v179_v50, %v179_v50 }
  0xec   :  { %v264_v43 = vpop.f32.mrb[4].mxu1 }
  0xed   :  { %v283_v44 = vadd.f32 %v3494_v42, %v264_v43  ;;  %v2855_v45 = vpop.f32.mrb[5].mxu1  ;;  %v270_v51 = vadd.f32 %v264_v43, %v179_v50  ;;  %v186_v43 = vrot.slane %v172_v41, %v3462_v22 }
  0xee   :  { %v267_v46 = vpop.f32.mrb[6].mxu1 }
  0xef   :  { %v2856_v47 = vpop.f32.mrb[7].mxu1  ;;  %v291_v48 = vrot.slane %v283_v44, %v3462_v22  ;;  %v2562_v52 = vmul.f32 -1.442695, %v270_v51 }
  0xf1   :  { %292 = vrot.lane.b32.xlu0 %v291_v48, %s3330_s3  ;;  %3182 = vpow2.f32 %v2562_v52 }
  0xfb   :  { %v3183_v53 = vpop.eup %3182 }
  0xfc   :  { %v274_v54 = vadd.f32 1.0, %v3183_v53 }
  0xfe   :  { %3184 = vrcp.f32 %v274_v54 }
 0x108   :  { %v3185_v55 = vpop.eup %3184 }
 0x109   :  { %v302_v61 = vsub.f32 1.0, %v3185_v55  ;;  %v308_v63 = vmul.f32 0.0, %v3185_v55 }
 0x163   :  { %v293_v56 = vpop.permute.xlu0 %292 }
 0x164   :  { %v295_v57 = vmul.f32 %v3185_v55, %v293_v56 }
 0x166   :  { %297 = vrot.lane.b32.xlu0 %v295_v57, %s3330_s3 }
 0x1d8   :  { %v298_v58 = vpop.permute.xlu0 %297 }
 0x1d9   :  { %v300_v59 = vadd.f32 %v298_v58, %v179_v50 }
 0x1db   :  { %3186 = vtanh.f32 %v300_v59 }
 0x1e5   :  { %v3187_v60 = vpop.eup %3186 }
 0x1e6   :  { %304 = vrot.lane.b32.xlu1 %v3187_v60, %s3331_s4 }
 0x258   :  { %v305_v62 = vpop.permute.xlu1 %304 }
 0x259   :  { %v307_v0 = vmul.f32 %v305_v62, %v302_v61 }
 0x25b   :  { %v3505_v1 = vadd.f32 %v308_v63, %v307_v0 }
 0x25d   :  { %v310_v3 = vpack.c.bf16 %v3505_v1, %v3505_v1 }
 0x25f   :  { %312 = vrot.lane.b32.xlu1 %v310_v3, %s3331_s4 }
 0x2d1   :  { %v313_v4 = vpop.permute.xlu1 %312 }
 0x2d2   :  { %2862 = vmatmul.mubr.msk.bf16.vlgmr.msra.gmra.mrb[0].mxu0 %vm226_vm4, %v313_v4 }
 0x2d3   :  { %2874 = vmatpush3.bf16.msra.mxu0 %v3429_v6  ;;  %2877 = vmatprep.mubr.msk.bf16.mxu0 %vm3327_vm1, %v3326_v2 }
 0x2d4   :  { %2875 = vmatprep.subr.bf16.mxu0 %v3326_v2 }
 0x2d7   :  { %2876 = vmatpush3.bf16.msra.mxu0 %v3455_v14 }
 0x2d8   :  { %2889 = vmatprep.subr.bf16.mxu0 %v3326_v2 }
 0x3a5   :  { %v351_v5 = vpop.f32.mrb[0].mxu0 }
 0x3a6   :  { %v364_v7 = vadd.f32 %v351_v5, %v3494_v42  ;;  %v2863_v8 = vpop.f32.mrb[1].mxu0  ;;  %v357_v13 = vadd.f32 %v351_v5, %v187_v12  ;;  %v188_v5 = vcombine.high %v186_v43, %v186_v43 }
 0x3a7   :  { %v354_v9 = vpop.f32.mrb[2].mxu0 }
 0x3a8   :  { %v372_v10 = vrot.slane %v364_v7, %v3462_v22  ;;  %v2864_v11 = vpop.f32.mrb[3].mxu0  ;;  %v2564_v15 = vmul.f32 -1.442695, %v357_v13 }
 0x3aa   :  { %373 = vrot.lane.b32.xlu0 %v372_v10, %s3330_s3  ;;  %3188 = vpow2.f32 %v2564_v15 }
 0x3b4   :  { %v3189_v16 = vpop.eup %3188 }
 0x3b5   :  { %v361_v17 = vadd.f32 1.0, %v3189_v16 }
 0x3b7   :  { %3190 = vrcp.f32 %v361_v17 }
 0x3c1   :  { %v3191_v18 = vpop.eup %3190 }
 0x3c2   :  { %v383_v25 = vsub.f32 1.0, %v3191_v18  ;;  %v389_v27 = vmul.f32 %v3191_v18, %v3505_v1 }
 0x41c   :  { %v374_v19 = vpop.permute.xlu0 %373 }
 0x41d   :  { %v376_v20 = vmul.f32 %v3191_v18, %v374_v19 }
 0x41f   :  { %378 = vrot.lane.b32.xlu1 %v376_v20, %s3330_s3 }
 0x491   :  { %v379_v21 = vpop.permute.xlu1 %378 }
 0x492   :  { %v381_v23 = vadd.f32 %v379_v21, %v187_v12 }
 0x494   :  { %3192 = vtanh.f32 %v381_v23 }
 0x49e   :  { %v3193_v24 = vpop.eup %3192 }
 0x49f   :  { %385 = vrot.lane.b32.xlu0 %v3193_v24, %s3331_s4 }
 0x511   :  { %v386_v26 = vpop.permute.xlu0 %385 }
 0x512   :  { %v388_v28 = vmul.f32 %v386_v26, %v383_v25 }
 0x514   :  { %v3523_v29 = vadd.f32 %v389_v27, %v388_v28 }
 0x516   :  { %v391_v31 = vpack.c.bf16 %v3523_v29, %v3523_v29 }
 0x518   :  { %393 = vrot.lane.b32.xlu1 %v391_v31, %s3331_s4 }
 0x58a   :  { %v394_v32 = vpop.permute.xlu1 %393 }
 0x58b   :  { %2870 = vmatmul.mubr.msk.bf16.vlgmr.msra.gmra.mrb[8].mxu1 %vm226_vm4, %v394_v32 }
 0x58c   :  { %2882 = vmatpush3.bf16.msra.mxu1 %v3429_v6  ;;  %2885 = vmatprep.mubr.msk.bf16.mxu1 %vm3327_vm1, %v3326_v2 }
 0x58d   :  { %2883 = vmatprep.subr.bf16.mxu1 %v3326_v2 }
 0x590   :  { %2884 = vmatpush3.bf16.msra.mxu1 %v3455_v14 }
 0x591   :  { %2897 = vmatprep.subr.bf16.mxu1 %v3326_v2 }
 0x65e   :  { %v432_v33 = vpop.f32.mrb[8].mxu1 }
 0x65f   :  { %v445_v34 = vadd.f32 %v432_v33, %v3494_v42  ;;  %v2871_v36 = vpop.f32.mrb[9].mxu1  ;;  %v438_v44 = vadd.f32 %v432_v33, %v186_v43 }
 0x660   :  { %v435_v37 = vpop.f32.mrb[10].mxu1 }
 0x661   :  { %v453_v38 = vrot.slane %v445_v34, %v3462_v22  ;;  %v2872_v39 = vpop.f32.mrb[11].mxu1  ;;  %v2566_v45 = vmul.f32 -1.442695, %v438_v44  ;;  %v196_v34 = vrot.slane %v3491_v40, %v3462_v22 }
 0x663   :  { %454 = vrot.lane.b32.xlu0 %v453_v38, %s3330_s3  ;;  %3194 = vpow2.f32 %v2566_v45 }
 0x66d   :  { %v3195_v46 = vpop.eup %3194 }
 0x66e   :  { %v442_v47 = vadd.f32 1.0, %v3195_v46 }
 0x670   :  { %3196 = vrcp.f32 %v442_v47 }
 0x67a   :  { %v3197_v48 = vpop.eup %3196 }
 0x67b   :  { %v464_v49 = vsub.f32 1.0, %v3197_v48  ;;  %v470_v56 = vmul.f32 %v3197_v48, %v3523_v29 }
 0x6d5   :  { %v455_v50 = vpop.permute.xlu0 %454 }
 0x6d6   :  { %v457_v51 = vmul.f32 %v3197_v48, %v455_v50 }
 0x6d8   :  { %459 = vrot.lane.b32.xlu1 %v457_v51, %s3330_s3 }
 0x74a   :  { %v460_v52 = vpop.permute.xlu1 %459 }
 0x74b   :  { %v462_v53 = vadd.f32 %v460_v52, %v186_v43 }
 0x74d   :  { %3198 = vtanh.f32 %v462_v53 }
 0x757   :  { %v3199_v54 = vpop.eup %3198 }
 0x758   :  { %466 = vrot.lane.b32.xlu0 %v3199_v54, %s3331_s4 }
 0x7ca   :  { %v467_v55 = vpop.permute.xlu0 %466 }
 0x7cb   :  { %v469_v57 = vmul.f32 %v467_v55, %v464_v49 }
 0x7cd   :  { %v3544_v58 = vadd.f32 %v470_v56, %v469_v57 }
 0x7cf   :  { %v472_v59 = vpack.c.bf16 %v3544_v58, %v3544_v58 }
 0x7d1   :  { %474 = vrot.lane.b32.xlu1 %v472_v59, %s3331_s4 }
 0x843   :  { %v475_v60 = vpop.permute.xlu1 %474 }
 0x844   :  { %2878 = vmatmul.mubr.msk.bf16.vlgmr.msra.gmra.mrb[4].mxu0 %vm226_vm4, %v475_v60 }
 0x845   :  { %2890 = vmatpush3.bf16.msra.mxu0 %v3429_v6  ;;  %2893 = vmatprep.mubr.msk.bf16.mxu0 %vm3327_vm1, %v3326_v2 }
 0x846   :  { %2891 = vmatprep.subr.bf16.mxu0 %v3326_v2 }
 0x849   :  { %2892 = vmatpush3.bf16.msra.mxu0 %v3455_v14 }
 0x84a   :  { %2905 = vmatprep.subr.bf16.mxu0 %v3326_v2 }
 0x917   :  { %v513_v61 = vpop.f32.mrb[4].mxu0 }
 0x918   :  { %v526_v62 = vadd.f32 %v513_v61, %v3494_v42  ;;  %v2879_v63 = vpop.f32.mrb[5].mxu0  ;;  %v519_v7 = vadd.f32 %v513_v61, %v188_v5 }
 0x919   :  { %v516_v0 = vpop.f32.mrb[6].mxu0 }
 0x91a   :  { %v534_v3 = vrot.slane %v526_v62, %v3462_v22  ;;  %v2880_v4 = vpop.f32.mrb[7].mxu0  ;;  %v2568_v8 = vmul.f32 -1.442695, %v519_v7 }
 0x91c   :  { %535 = vrot.lane.b32.xlu0 %v534_v3, %s3330_s3  ;;  %3200 = vpow2.f32 %v2568_v8 }
 0x926   :  { %v3201_v9 = vpop.eup %3200 }
 0x927   :  { %v523_v10 = vadd.f32 1.0, %v3201_v9 }
 0x929   :  { %3202 = vrcp.f32 %v523_v10 }
 0x933   :  { %v3203_v11 = vpop.eup %3202 }
 0x934   :  { %v545_v18 = vsub.f32 1.0, %v3203_v11  ;;  %v551_v20 = vmul.f32 %v3203_v11, %v3544_v58 }
 0x98e   :  { %v536_v12 = vpop.permute.xlu0 %535 }
 0x98f   :  { %v538_v13 = vmul.f32 %v3203_v11, %v536_v12 }
 0x991   :  { %540 = vrot.lane.b32.xlu1 %v538_v13, %s3330_s3 }
 0xa03   :  { %v541_v15 = vpop.permute.xlu1 %540 }
 0xa04   :  { %v543_v16 = vadd.f32 %v541_v15, %v188_v5 }
 0xa06   :  { %3204 = vtanh.f32 %v543_v16 }
 0xa10   :  { %v3205_v17 = vpop.eup %3204 }
 0xa11   :  { %547 = vrot.lane.b32.xlu0 %v3205_v17, %s3331_s4 }
 0xa83   :  { %v548_v19 = vpop.permute.xlu0 %547 }
 0xa84   :  { %v550_v21 = vmul.f32 %v548_v19, %v545_v18 }
 0xa86   :  { %v3562_v23 = vadd.f32 %v551_v20, %v550_v21 }
 0xa88   :  { %v553_v24 = vpack.c.bf16 %v3562_v23, %v3562_v23 }
 0xa8a   :  { %555 = vrot.lane.b32.xlu1 %v553_v24, %s3331_s4 }
 0xafc   :  { %v556_v25 = vpop.permute.xlu1 %555 }
 0xafd   :  { %2886 = vmatmul.mubr.msk.bf16.vlgmr.msra.gmra.mrb[12].mxu1 %vm226_vm4, %v556_v25 }
 0xafe   :  { %2898 = vmatpush3.bf16.msra.mxu1 %v3429_v6  ;;  %2901 = vmatprep.mubr.msk.bf16.mxu1 %vm3327_vm1, %v3326_v2 }
 0xaff   :  { %2899 = vmatprep.subr.bf16.mxu1 %v3326_v2 }
 0xb02   :  { %2900 = vmatpush3.bf16.msra.mxu1 %v3455_v14 }
 0xb03   :  { %2913 = vmatprep.subr.bf16.mxu1 %v3326_v2 }
 0xbd0   :  { %v594_v26 = vpop.f32.mrb[12].mxu1 }
 0xbd1   :  { %v607_v27 = vadd.f32 %v594_v26, %v3494_v42  ;;  %v2887_v28 = vpop.f32.mrb[13].mxu1  ;;  %v600_v36 = vadd.f32 %v594_v26, %v196_v34  ;;  %v189_v26 = vcombine.high %v3491_v40, %v3491_v40 }
 0xbd2   :  { %v597_v31 = vpop.f32.mrb[14].mxu1 }
 0xbd3   :  { %v615_v32 = vrot.slane %v607_v27, %v3462_v22  ;;  %v2888_v33 = vpop.f32.mrb[15].mxu1  ;;  %v2570_v37 = vmul.f32 -1.442695, %v600_v36  ;;  %v203_v27 = vrot.slane %v189_v26, %v3462_v22 }
 0xbd5   :  { %616 = vrot.lane.b32.xlu0 %v615_v32, %s3330_s3  ;;  %3206 = vpow2.f32 %v2570_v37 }
 0xbdf   :  { %v3207_v38 = vpop.eup %3206 }
 0xbe0   :  { %v604_v39 = vadd.f32 1.0, %v3207_v38 }
 0xbe2   :  { %3208 = vrcp.f32 %v604_v39 }
 0xbec   :  { %v3209_v41 = vpop.eup %3208 }
 0xbed   :  { %v626_v48 = vsub.f32 1.0, %v3209_v41  ;;  %v632_v51 = vmul.f32 %v3209_v41, %v3562_v23 }
 0xc47   :  { %v617_v43 = vpop.permute.xlu0 %616 }
 0xc48   :  { %v619_v44 = vmul.f32 %v3209_v41, %v617_v43 }
 0xc4a   :  { %621 = vrot.lane.b32.xlu1 %v619_v44, %s3330_s3 }
 0xcbc   :  { %v622_v45 = vpop.permute.xlu1 %621 }
 0xcbd   :  { %v624_v46 = vadd.f32 %v622_v45, %v196_v34 }
 0xcbf   :  { %3210 = vtanh.f32 %v624_v46 }
 0xcc9   :  { %v3211_v47 = vpop.eup %3210 }
 0xcca   :  { %628 = vrot.lane.b32.xlu0 %v3211_v47, %s3331_s4 }
 0xd3c   :  { %v629_v50 = vpop.permute.xlu0 %628 }
 0xd3d   :  { %v631_v52 = vmul.f32 %v629_v50, %v626_v48 }
 0xd3f   :  { %v3582_v53 = vadd.f32 %v632_v51, %v631_v52 }
 0xd41   :  { %v634_v54 = vpack.c.bf16 %v3582_v53, %v3582_v53 }
 0xd43   :  { %636 = vrot.lane.b32.xlu1 %v634_v54, %s3331_s4 }
 0xdb5   :  { %v637_v49 = vpop.permute.xlu1 %636 }
 0xdb6   :  { %2894 = vmatmul.mubr.msk.bf16.vlgmr.msra.gmra.mrb[8].mxu0 %vm226_vm4, %v637_v49 }
 0xdb7   :  { %2906 = vmatpush3.bf16.msra.mxu0 %v3429_v6  ;;  %2909 = vmatprep.mubr.msk.bf16.mxu0 %vm3327_vm1, %v3326_v2  ;;  %v204_v6 = vcombine.high %v196_v34, %v196_v34 }
 0xdb8   :  { %2907 = vmatprep.subr.bf16.mxu0 %v3326_v2 }
 0xdbb   :  { %2908 = vmatpush3.bf16.msra.mxu0 %v3455_v14 }
 0xdbc   :  { %2921 = vmatprep.subr.bf16.mxu0 %v3326_v2 }
 0xe89   :  { %v675_v55 = vpop.f32.mrb[8].mxu0 }
 0xe8a   :  { %v688_v56 = vadd.f32 %v675_v55, %v3494_v42  ;;  %v2895_v57 = vpop.f32.mrb[9].mxu0  ;;  %v681_v62 = vadd.f32 %v675_v55, %v204_v6 }
 0xe8b   :  { %v678_v59 = vpop.f32.mrb[10].mxu0 }
 0xe8c   :  { %v696_v60 = vrot.slane %v688_v56, %v3462_v22  ;;  %v2896_v61 = vpop.f32.mrb[11].mxu0  ;;  %v2572_v63 = vmul.f32 -1.442695, %v681_v62  ;;  %v205_v56 = vcombine.high %v203_v27, %v203_v27 }
 0xe8e   :  { %697 = vrot.lane.b32.xlu0 %v696_v60, %s3330_s3  ;;  %3212 = vpow2.f32 %v2572_v63 }
 0xe98   :  { %v3213_v0 = vpop.eup %3212 }
 0xe99   :  { %v685_v3 = vadd.f32 1.0, %v3213_v0 }
 0xe9b   :  { %3214 = vrcp.f32 %v685_v3 }
 0xea5   :  { %v3215_v14 = vpop.eup %3214 }
 0xea6   :  { %v707_v10 = vsub.f32 1.0, %v3215_v14  ;;  %v713_v12 = vmul.f32 %v3215_v14, %v3582_v53 }
 0xf00   :  { %v698_v4 = vpop.permute.xlu0 %697 }
 0xf01   :  { %v700_v5 = vmul.f32 %v3215_v14, %v698_v4  ;;  %v3629_v14 = vld [vmem:[%s4057_s6] sm:$0xff]  }
 0xf02   :  { %v3128_v4 = vld [vmem:[%s4056_s5] sm:$0xff]  }
 0xf03   :  { %702 = vrot.lane.b32.xlu1 %v700_v5, %s3330_s3  ;;  %v3638_v5 = vld [vmem:[%s4057_s6 + $0x8] sm:$0xff]  }
 0xf75   :  { %v703_v7 = vpop.permute.xlu1 %702 }
 0xf76   :  { %v705_v8 = vadd.f32 %v703_v7, %v204_v6  ;;  %v3129_v7 = vld [vmem:[%s4056_s5 + $0x8] sm:$0xff]  }
 0xf78   :  { %3216 = vtanh.f32 %v705_v8  ;;  %v898_v8 = vcombine.low %v3562_v23, %v3562_v23 }
 0xf82   :  { %v3217_v9 = vpop.eup %3216 }
 0xf83   :  { %709 = vrot.lane.b32.xlu0 %v3217_v9, %s3331_s4 }
 0xff5   :  { %v710_v11 = vpop.permute.xlu0 %709 }
 0xff6   :  { %v712_v13 = vmul.f32 %v710_v11, %v707_v10  ;;  %v878_v11 = vcombine.low %v3523_v29, %v3523_v29 }
 0xff8   :  { %v3600_v15 = vadd.f32 %v713_v12, %v712_v13  ;;  %v885_v23 = vrot.slane %v878_v11, %v3462_v22 }
 0xffa   :  { %v715_v16 = vpack.c.bf16 %v3600_v15, %v3600_v15  ;;  %v947_v26 = vsel %vm946_vm5, %v3505_v1, %v885_v23 }
 0xffc   :  { %717 = vrot.lane.b32.xlu1 %v715_v16, %s3331_s4  ;;  %v894_v16 = vrot.slane %v3544_v58, %v3462_v22 }
0x106e   :  { %v718_v17 = vpop.permute.xlu1 %717 }
0x106f   :  { %2902 = vmatmul.mubr.msk.bf16.vlgmr.msra.gmra.mrb[16].mxu1 %vm226_vm4, %v718_v17 }
0x1070   :  { %2917 = vmatprep.mubr.msk.bf16.mxu1 %vm3327_vm1, %v3326_v2  ;;  %2914 = vmatpush3.bf16.msra.mxu1 %v3128_v4 }
0x1071   :  { %2915 = vmatprep.subr.bf16.mxu1 %v3326_v2 }
0x1074   :  { %2916 = vmatpush3.bf16.msra.mxu1 %v3129_v7 }
0x1075   :  { %2929 = vmatprep.subr.bf16.mxu1 %v3326_v2 }
0x1142   :  { %v756_v18 = vpop.f32.mrb[16].mxu1 }
0x1143   :  { %v769_v19 = vadd.f32 %v756_v18, %v3494_v42  ;;  %v2903_v20 = vpop.f32.mrb[17].mxu1  ;;  %v762_v28 = vadd.f32 %v756_v18, %v203_v27  ;;  %v905_v18 = vrot.slane %v898_v8, %v3462_v22 }
0x1144   :  { %v759_v21 = vpop.f32.mrb[18].mxu1 }
0x1145   :  { %v777_v24 = vrot.slane %v769_v19, %v3462_v22  ;;  %v2904_v25 = vpop.f32.mrb[19].mxu1  ;;  %v2574_v31 = vmul.f32 -1.442695, %v762_v28  ;;  %v895_v21 = vcombine.low %v894_v16, %v894_v16 }
0x1146   :  { %v906_v25 = vcombine.low %v905_v18, %v905_v18 }
0x1147   :  { %778 = vrot.lane.b32.xlu0 %v777_v24, %s3330_s3  ;;  %3218 = vpow2.f32 %v2574_v31  ;;  %v948_v28 = vsel %vm125_vm0, %v947_v26, %v895_v21 }
0x1151   :  { %v3219_v32 = vpop.eup %3218 }
0x1152   :  { %v766_v33 = vadd.f32 1.0, %v3219_v32  ;;  %v950_v32 = vsel %vm949_vm6, %v948_v28, %v906_v25 }
0x1154   :  { %3220 = vrcp.f32 %v766_v33 }
0x115e   :  { %v3221_v34 = vpop.eup %3220 }
0x115f   :  { %v788_v40 = vsub.f32 1.0, %v3221_v34  ;;  %v794_v44 = vmul.f32 %v3221_v34, %v3600_v15 }
0x11b9   :  { %v779_v36 = vpop.permute.xlu0 %778 }
0x11ba   :  { %v781_v37 = vmul.f32 %v3221_v34, %v779_v36  ;;  %v963_v36 = vld [vmem:[%s4059_s8] sm:$0x1] }
0x11bc   :  { %783 = vrot.lane.b32.xlu1 %v781_v37, %s3330_s3  ;;  %v3681_v37 = vrot.slane %v963_v36, %v3488_v35 }
0x122e   :  { %v784_v38 = vpop.permute.xlu1 %783 }
0x122f   :  { %v786_v39 = vadd.f32 %v784_v38, %v203_v27 }
0x1231   :  { %3222 = vtanh.f32 %v786_v39 }
0x123b   :  { %v3223_v41 = vpop.eup %3222 }
0x123c   :  { %790 = vrot.lane.b32.xlu0 %v3223_v41, %s3331_s4 }
0x12ae   :  { %v791_v43 = vpop.permute.xlu0 %790 }
0x12af   :  { %v793_v45 = vmul.f32 %v791_v43, %v788_v40 }
0x12b1   :  { %v795_v46 = vadd.f32 %v794_v44, %v793_v45  ;;  %v962_v44 = vld [vmem:[%s4058_s7] sm:$0x1]  ;;  %v964_v45 = vsel %vm67_vm3, %v963_v36, 0.0 }
0x12b3   :  { %v796_v47 = vpack.c.bf16 %v795_v46, %v795_v46  ;;  %v925_v17 = vrot.slane %v795_v46, %v3462_v22 }
0x12b5   :  { %798 = vrot.lane.b32.xlu1 %v796_v47, %s3331_s4 }
0x1327   :  { %v799_v48 = vpop.permute.xlu1 %798 }
0x1328   :  { %2910 = vmatmul.mubr.msk.bf16.vlgmr.msra.gmra.mrb[12].mxu0 %vm226_vm4, %v799_v48 }
0x1329   :  { %2925 = vmatprep.mubr.msk.bf16.mxu0 %vm3327_vm1, %v3326_v2  ;;  %2922 = vmatpush3.bf16.msra.mxu0 %v3629_v14 }
0x132a   :  { %2923 = vmatprep.subr.bf16.mxu0 %v3326_v2 }
0x132d   :  { %2924 = vmatpush3.bf16.msra.mxu0 %v3638_v5 }
0x132e   :  { %2937 = vmatprep.subr.bf16.mxu0 %v3326_v2 }
0x1330   :  { %2926 = vmatmul.mubr.bf16.vlgmr.msra.gmra.mrb[16].mxu0 %v3329_v30  ;;  %v909_v30 = vcombine.low %v3600_v15, %v3600_v15  ;;  %v926_v15 = vcombine.low %v925_v17, %v925_v17 }
0x1331   :  { %2938 = vmatpush3.bf16.msra.mxu0 %v3629_v14  ;;  %2941 = vmatprep.mubr.msk.bf16.mxu0 %vm3327_vm1, %v3326_v2 }
0x1332   :  { %2939 = vmatprep.subr.bf16.mxu0 %v3326_v2  ;;  %v916_v20 = vrot.slane %v909_v30, %v3462_v22 }
0x1334   :  { %v951_v27 = vsel %vm946_vm5, %v3582_v53, %v916_v20 }
0x1335   :  { %2940 = vmatpush3.bf16.msra.mxu0 %v3638_v5  ;;  %v952_v31 = vsel %vm125_vm0, %v951_v27, %v926_v15 }
0x1336   :  { %2953 = vmatprep.subr.bf16.mxu0 %v3326_v2 }
0x13fb   :  { %v837_v50 = vpop.f32.mrb[12].mxu0 }
0x13fc   :  { %v850_v51 = vadd.f32 %v837_v50, %v3494_v42  ;;  %v2911_v52 = vpop.f32.mrb[13].mxu0  ;;  %v843_v57 = vadd.f32 %v837_v50, %v205_v56 }
0x13fd   :  { %v840_v54 = vpop.f32.mrb[14].mxu0 }
0x13fe   :  { %v858_v49 = vrot.slane %v850_v51, %v3462_v22  ;;  %v2912_v55 = vpop.f32.mrb[15].mxu0  ;;  %v2576_v59 = vmul.f32 -1.442695, %v843_v57 }
0x1400   :  { %859 = vrot.lane.b32.xlu0 %v858_v49, %s3330_s3  ;;  %3224 = vpow2.f32 %v2576_v59 }
0x1403   :  { %v1122_v38 = vpop.f32.mrb[16].mxu0 }
0x1404   :  { %v1141_v1 = vadd.f32 %v3681_v37, %v1122_v38  ;;  %v2927_v53 = vpop.f32.mrb[17].mxu0 }
0x1405   :  { %v1125_v39 = vpop.f32.mrb[18].mxu0 }
0x1406   :  { %v1149_v41 = vrot.slane %v1141_v1, %v3462_v22  ;;  %v2928_v40 = vpop.f32.mrb[19].mxu0 }
0x140a   :  { %v3225_v60 = vpop.eup %3224 }
0x140b   :  { %v847_v61 = vadd.f32 1.0, %v3225_v60 }
0x140d   :  { %3226 = vrcp.f32 %v847_v61 }
0x1417   :  { %v3227_v6 = vpop.eup %3226 }
0x1418   :  { %v869_v9 = vsub.f32 1.0, %v3227_v6  ;;  %v875_v12 = vmul.f32 %v3227_v6, %v795_v46  ;;  %v965_v46 = vadd.f32 %v964_v45, %v962_v44 }
0x141a   :  { %v971_v47 = vrot.slane %v965_v46, %v3488_v35 }
0x1472   :  { %v860_v62 = vpop.permute.xlu0 %859 }
0x1473   :  { %v862_v63 = vmul.f32 %v3227_v6, %v860_v62 }
0x1475   :  { %864 = vrot.lane.b32.xlu1 %v862_v63, %s3330_s3 }
0x14e7   :  { %v865_v42 = vpop.permute.xlu1 %864 }
0x14e8   :  { %v867_v0 = vadd.f32 %v865_v42, %v205_v56 }
0x14ea   :  { %3228 = vtanh.f32 %v867_v0 }
0x14f4   :  { %v3229_v3 = vpop.eup %3228 }
0x14f5   :  { %871 = vrot.lane.b32.xlu0 %v3229_v3, %s3331_s4 }
0x14f9   :  { %1150 = vrot.lane.b32.xlu0 %v1149_v41, %s3330_s3 }
0x1567   :  { %v872_v10 = vpop.permute.xlu0 %871 }
0x1568   :  { %v874_v13 = vmul.f32 %v872_v10, %v869_v9 }
0x156a   :  { %v3665_v19 = vadd.f32 %v875_v12, %v874_v13 }
0x156b   :  { %v1151_v61 = vpop.permute.xlu0 %1150 }
0x156c   :  { %v929_v29 = vcombine.low %v3665_v19, %v3665_v19 }
0x156e   :  { %v936_v24 = vrot.slane %v929_v29, %v3462_v22 }
0x1570   :  { %v944_v58 = vcombine.low %v936_v24, %v936_v24 }
0x1572   :  { %v953_v33 = vsel %vm949_vm6, %v952_v31, %v944_v58 }
0x1573   :  { %v966_v34 = vpack.c.bf16 %v953_v33, %v950_v32 }
0x1575   :  { %974 = vrot.lane.b32.xlu1 %v966_v34, %s3331_s4 }
0x15e7   :  { %v975_v43 = vpop.permute.xlu1 %974 }
0x15e8   :  { %2918 = vmatmul.mubr.msk.bf16.vlgmr.msra.gmra.mrb[20].mxu1 %vm226_vm4, %v975_v43 }
0x15e9   :  { %2930 = vmatpush3.bf16.msra.mxu1 %v3629_v14  ;;  %2933 = vmatprep.mubr.msk.bf16.mxu1 %vm3327_vm1, %v3326_v2 }
0x15ea   :  { %2931 = vmatprep.subr.bf16.mxu1 %v3326_v2 }
0x15ed   :  { %2932 = vmatpush3.bf16.msra.mxu1 %v3638_v5 }
0x15ee   :  { %2945 = vmatprep.subr.bf16.mxu1 %v3326_v2 }
0x16bb   :  { %v1025_v48 = vpop.f32.mrb[20].mxu1 }
0x16bc   :  { %v3698_v50 = vadd.f32 %v1025_v48, %v971_v47  ;;  %v2919_v51 = vpop.f32.mrb[21].mxu1 }
0x16bd   :  { %v1028_v52 = vpop.f32.mrb[22].mxu1 }
0x16be   :  { %v1041_v54 = vrot.slane %v3698_v50, %v3462_v22  ;;  %v3702_v49 = vadd.f32 %v1028_v52, %v971_v47  ;;  %v2920_v55 = vpop.f32.mrb[23].mxu1  ;;  %v1034_v44 = vcombine.high %v3698_v50, %v3698_v50 }
0x16c0   :  { %v1128_v56 = vadd.f32 %v1122_v38, %v1041_v54  ;;  %v1049_v18 = vcombine.high %v1041_v54, %v1041_v54  ;;  %v1048_v45 = vrot.slane %v1034_v44, %v3462_v22 }
0x16c2   :  { %v2582_v57 = vmul.f32 -1.442695, %v1128_v56 }
0x16c4   :  { %3230 = vpow2.f32 %v2582_v57 }
0x16ce   :  { %v3231_v59 = vpop.eup %3230 }
0x16cf   :  { %v1132_v60 = vadd.f32 1.0, %v3231_v59 }
0x16d1   :  { %3232 = vrcp.f32 %v1132_v60 }
0x16db   :  { %v3233_v6 = vpop.eup %3232 }
0x16dc   :  { %v1153_v35 = vmul.f32 %v3233_v6, %v1151_v61  ;;  %v1160_v0 = vsub.f32 1.0, %v3233_v6  ;;  %v1166_v4 = vmul.f32 0.0, %v3233_v6 }
0x16de   :  { %1155 = vrot.lane.b32.xlu1 %v1153_v35, %s3330_s3 }
0x1750   :  { %v1156_v62 = vpop.permute.xlu1 %1155 }
0x1751   :  { %v1158_v63 = vadd.f32 %v1156_v62, %v1041_v54 }
0x1753   :  { %3234 = vtanh.f32 %v1158_v63 }
0x175d   :  { %v3235_v42 = vpop.eup %3234 }
0x175e   :  { %1162 = vrot.lane.b32.xlu0 %v3235_v42, %s3331_s4 }
0x17d0   :  { %v1163_v3 = vpop.permute.xlu0 %1162 }
0x17d1   :  { %v1165_v7 = vmul.f32 %v1163_v3, %v1160_v0 }
0x17d3   :  { %v1167_v8 = vadd.f32 %v1166_v4, %v1165_v7 }
0x17d5   :  { %v1168_v9 = vpack.c.bf16 %v1167_v8, %v1167_v8 }
0x17d7   :  { %1170 = vrot.lane.b32.xlu1 %v1168_v9, %s3331_s4  ;;  %v1050_v9 = vcombine.high %v1048_v45, %v1048_v45 }
0x1849   :  { %v1171_v10 = vpop.permute.xlu1 %1170 }
0x184a   :  { %2934 = vmatmul.mubr.msk.bf16.vlgmr.msra.gmra.mrb[24].mxu1 %vm226_vm4, %v1171_v10 }
0x184b   :  { %2946 = vmatpush3.bf16.msra.mxu1 %v3629_v14  ;;  %2949 = vmatprep.mubr.msk.bf16.mxu1 %vm3327_vm1, %v3326_v2 }
0x184c   :  { %2947 = vmatprep.subr.bf16.mxu1 %v3326_v2 }
0x184f   :  { %2948 = vmatpush3.bf16.msra.mxu1 %v3638_v5 }
0x1850   :  { %2961 = vmatprep.subr.bf16.mxu1 %v3326_v2 }
0x191d   :  { %v1209_v11 = vpop.f32.mrb[24].mxu1 }
0x191e   :  { %v1222_v30 = vadd.f32 %v1209_v11, %v3681_v37  ;;  %v2935_v12 = vpop.f32.mrb[25].mxu1  ;;  %v1215_v23 = vadd.f32 %v1209_v11, %v1049_v18 }
0x191f   :  { %v1212_v13 = vpop.f32.mrb[26].mxu1 }
0x1920   :  { %v1230_v16 = vrot.slane %v1222_v30, %v3462_v22  ;;  %v2936_v17 = vpop.f32.mrb[27].mxu1  ;;  %v2584_v20 = vmul.f32 -1.442695, %v1215_v23 }
0x1922   :  { %1231 = vrot.lane.b32.xlu0 %v1230_v16, %s3330_s3  ;;  %3236 = vpow2.f32 %v2584_v20 }
0x192c   :  { %v3237_v29 = vpop.eup %3236 }
0x192d   :  { %v1219_v21 = vadd.f32 1.0, %v3237_v29 }
0x192f   :  { %3238 = vrcp.f32 %v1219_v21 }
0x1939   :  { %v3239_v15 = vpop.eup %3238 }
0x193a   :  { %v1241_v28 = vsub.f32 1.0, %v3239_v15  ;;  %v1247_v32 = vmul.f32 %v3239_v15, %v1167_v8 }
0x1994   :  { %v1232_v24 = vpop.permute.xlu0 %1231 }
0x1995   :  { %v1234_v25 = vmul.f32 %v3239_v15, %v1232_v24 }
0x1997   :  { %1236 = vrot.lane.b32.xlu1 %v1234_v25, %s3330_s3 }
0x1a09   :  { %v1237_v58 = vpop.permute.xlu1 %1236 }
0x1a0a   :  { %v1239_v26 = vadd.f32 %v1237_v58, %v1049_v18 }
0x1a0c   :  { %3240 = vtanh.f32 %v1239_v26 }
0x1a16   :  { %v3241_v27 = vpop.eup %3240 }
0x1a17   :  { %1243 = vrot.lane.b32.xlu0 %v3241_v27, %s3331_s4 }
0x1a89   :  { %v1244_v31 = vpop.permute.xlu0 %1243 }
0x1a8a   :  { %v1246_v33 = vmul.f32 %v1244_v31, %v1241_v28 }
0x1a8c   :  { %v1248_v34 = vadd.f32 %v1247_v32, %v1246_v33 }
0x1a8e   :  { %v1249_v36 = vpack.c.bf16 %v1248_v34, %v1248_v34 }
0x1a90   :  { %1251 = vrot.lane.b32.xlu1 %v1249_v36, %s3331_s4  ;;  %v1058_v36 = vrot.slane %v3702_v49, %v3462_v22 }
0x1b02   :  { %v1252_v38 = vpop.permute.xlu1 %1251 }
0x1b03   :  { %2942 = vmatmul.mubr.msk.bf16.vlgmr.msra.gmra.mrb[20].mxu0 %vm226_vm4, %v1252_v38 }
0x1b04   :  { %2954 = vmatpush3.bf16.msra.mxu0 %v3629_v14  ;;  %2957 = vmatprep.mubr.msk.bf16.mxu0 %vm3327_vm1, %v3326_v2 }
0x1b05   :  { %2955 = vmatprep.subr.bf16.mxu0 %v3326_v2 }
0x1b08   :  { %2956 = vmatpush3.bf16.msra.mxu0 %v3638_v5 }
0x1b09   :  { %2969 = vmatprep.subr.bf16.mxu0 %v3326_v2 }
0x1bd6   :  { %v1290_v1 = vpop.f32.mrb[20].mxu0 }
0x1bd7   :  { %v1303_v53 = vadd.f32 %v1290_v1, %v3681_v37  ;;  %v2943_v39 = vpop.f32.mrb[21].mxu0  ;;  %v1296_v46 = vadd.f32 %v1290_v1, %v1048_v45 }
0x1bd8   :  { %v1293_v41 = vpop.f32.mrb[22].mxu0 }
0x1bd9   :  { %v1311_v40 = vrot.slane %v1303_v53, %v3462_v22  ;;  %v2944_v43 = vpop.f32.mrb[23].mxu0  ;;  %v2586_v47 = vmul.f32 -1.442695, %v1296_v46 }
0x1bdb   :  { %1312 = vrot.lane.b32.xlu0 %v1311_v40, %s3330_s3  ;;  %3242 = vpow2.f32 %v2586_v47 }
0x1be5   :  { %v3243_v48 = vpop.eup %3242 }
0x1be6   :  { %v1300_v51 = vadd.f32 1.0, %v3243_v48 }
0x1be8   :  { %3244 = vrcp.f32 %v1300_v51 }
0x1bf2   :  { %v3245_v52 = vpop.eup %3244 }
0x1bf3   :  { %v1322_v50 = vsub.f32 1.0, %v3245_v52  ;;  %v1328_v61 = vmul.f32 %v3245_v52, %v1248_v34 }
0x1c4d   :  { %v1313_v54 = vpop.permute.xlu0 %1312 }
0x1c4e   :  { %v1315_v55 = vmul.f32 %v3245_v52, %v1313_v54 }
0x1c50   :  { %1317 = vrot.lane.b32.xlu1 %v1315_v55, %s3330_s3 }
0x1cc2   :  { %v1318_v56 = vpop.permute.xlu1 %1317 }
0x1cc3   :  { %v1320_v57 = vadd.f32 %v1318_v56, %v1048_v45 }
0x1cc5   :  { %3246 = vtanh.f32 %v1320_v57 }
0x1ccf   :  { %v3247_v59 = vpop.eup %3246 }
0x1cd0   :  { %1324 = vrot.lane.b32.xlu0 %v3247_v59, %s3331_s4 }
0x1d42   :  { %v1325_v60 = vpop.permute.xlu0 %1324 }
0x1d43   :  { %v1327_v6 = vmul.f32 %v1325_v60, %v1322_v50 }
0x1d45   :  { %v1329_v35 = vadd.f32 %v1328_v61, %v1327_v6 }
0x1d47   :  { %v1330_v62 = vpack.c.bf16 %v1329_v35, %v1329_v35 }
0x1d49   :  { %1332 = vrot.lane.b32.xlu1 %v1330_v62, %s3331_s4 }
0x1dbb   :  { %v1333_v63 = vpop.permute.xlu1 %1332 }
0x1dbc   :  { %2950 = vmatmul.mubr.msk.bf16.vlgmr.msra.gmra.mrb[28].mxu1 %vm226_vm4, %v1333_v63 }
0x1dbd   :  { %2962 = vmatpush3.bf16.msra.mxu1 %v3629_v14  ;;  %2965 = vmatprep.mubr.msk.bf16.mxu1 %vm3327_vm1, %v3326_v2 }
0x1dbe   :  { %2963 = vmatprep.subr.bf16.mxu1 %v3326_v2 }
0x1dc1   :  { %2964 = vmatpush3.bf16.msra.mxu1 %v3638_v5 }
0x1dc2   :  { %2977 = vmatprep.subr.bf16.mxu1 %v3326_v2 }
0x1e8f   :  { %v1371_v42 = vpop.f32.mrb[28].mxu1 }
0x1e90   :  { %v1384_v0 = vadd.f32 %v1371_v42, %v3681_v37  ;;  %v2951_v3 = vpop.f32.mrb[29].mxu1  ;;  %v1377_v10 = vadd.f32 %v1371_v42, %v1050_v9 }
0x1e91   :  { %v1374_v4 = vpop.f32.mrb[30].mxu1 }
0x1e92   :  { %v1392_v7 = vrot.slane %v1384_v0, %v3462_v22  ;;  %v2952_v8 = vpop.f32.mrb[31].mxu1  ;;  %v2588_v11 = vmul.f32 -1.442695, %v1377_v10 }
0x1e94   :  { %1393 = vrot.lane.b32.xlu0 %v1392_v7, %s3330_s3  ;;  %3248 = vpow2.f32 %v2588_v11 }
0x1e9e   :  { %v3249_v30 = vpop.eup %3248 }
0x1e9f   :  { %v1381_v12 = vadd.f32 1.0, %v3249_v30 }
0x1ea1   :  { %3250 = vrcp.f32 %v1381_v12 }
0x1eab   :  { %v3251_v13 = vpop.eup %3250 }
0x1eac   :  { %v1403_v29 = vsub.f32 1.0, %v3251_v13  ;;  %v1409_v15 = vmul.f32 %v3251_v13, %v1329_v35 }
0x1f06   :  { %v1394_v16 = vpop.permute.xlu0 %1393 }
0x1f07   :  { %v1396_v17 = vmul.f32 %v3251_v13, %v1394_v16 }
0x1f09   :  { %1398 = vrot.lane.b32.xlu1 %v1396_v17, %s3330_s3 }
0x1f7b   :  { %v1399_v18 = vpop.permute.xlu1 %1398 }
0x1f7c   :  { %v1401_v23 = vadd.f32 %v1399_v18, %v1050_v9 }
0x1f7e   :  { %3252 = vtanh.f32 %v1401_v23 }
0x1f88   :  { %v3253_v20 = vpop.eup %3252 }
0x1f89   :  { %1405 = vrot.lane.b32.xlu0 %v3253_v20, %s3331_s4 }
0x1ffb   :  { %v1406_v21 = vpop.permute.xlu0 %1405 }
0x1ffc   :  { %v1408_v24 = vmul.f32 %v1406_v21, %v1403_v29 }
0x1ffe   :  { %v1410_v25 = vadd.f32 %v1409_v15, %v1408_v24  ;;  %v1051_v15 = vcombine.high %v3702_v49, %v3702_v49 }
0x2000   :  { %v1411_v58 = vpack.c.bf16 %v1410_v25, %v1410_v25  ;;  %v1065_v24 = vrot.slane %v1051_v15, %v3462_v22 }
0x2002   :  { %1413 = vrot.lane.b32.xlu1 %v1411_v58, %s3331_s4 }
0x2074   :  { %v1414_v26 = vpop.permute.xlu1 %1413 }
0x2075   :  { %2958 = vmatmul.mubr.msk.bf16.vlgmr.msra.gmra.mrb[24].mxu0 %vm226_vm4, %v1414_v26 }
0x2076   :  { %2970 = vmatpush3.bf16.msra.mxu0 %v3629_v14  ;;  %2973 = vmatprep.mubr.msk.bf16.mxu0 %vm3327_vm1, %v3326_v2 }
0x2077   :  { %2971 = vmatprep.subr.bf16.mxu0 %v3326_v2 }
0x207a   :  { %2972 = vmatpush3.bf16.msra.mxu0 %v3638_v5 }
0x207b   :  { %2985 = vmatprep.subr.bf16.mxu0 %v3326_v2 }
0x2148   :  { %v1452_v27 = vpop.f32.mrb[24].mxu0 }
0x2149   :  { %v1465_v28 = vadd.f32 %v1452_v27, %v3681_v37  ;;  %v2959_v31 = vpop.f32.mrb[25].mxu0  ;;  %v1458_v38 = vadd.f32 %v1452_v27, %v1058_v36 }
0x214a   :  { %v1455_v32 = vpop.f32.mrb[26].mxu0 }
0x214b   :  { %v1473_v33 = vrot.slane %v1465_v28, %v3462_v22  ;;  %v2960_v34 = vpop.f32.mrb[27].mxu0  ;;  %v2590_v1 = vmul.f32 -1.442695, %v1458_v38 }
0x214d   :  { %1474 = vrot.lane.b32.xlu0 %v1473_v33, %s3330_s3  ;;  %3254 = vpow2.f32 %v2590_v1 }
0x2157   :  { %v3255_v53 = vpop.eup %3254 }
0x2158   :  { %v1462_v39 = vadd.f32 1.0, %v3255_v53 }
0x215a   :  { %3256 = vrcp.f32 %v1462_v39 }
0x2164   :  { %v3257_v41 = vpop.eup %3256 }
0x2165   :  { %v1484_v47 = vsub.f32 1.0, %v3257_v41  ;;  %v1490_v51 = vmul.f32 %v3257_v41, %v1410_v25 }
0x21bf   :  { %v1475_v40 = vpop.permute.xlu0 %1474 }
0x21c0   :  { %v1477_v43 = vmul.f32 %v3257_v41, %v1475_v40 }
0x21c2   :  { %1479 = vrot.lane.b32.xlu1 %v1477_v43, %s3330_s3 }
0x2234   :  { %v1480_v44 = vpop.permute.xlu1 %1479 }
0x2235   :  { %v1482_v45 = vadd.f32 %v1480_v44, %v1058_v36 }
0x2237   :  { %3258 = vtanh.f32 %v1482_v45 }
0x2241   :  { %v3259_v46 = vpop.eup %3258 }
0x2242   :  { %1486 = vrot.lane.b32.xlu0 %v3259_v46, %s3331_s4 }
0x22b4   :  { %v1487_v48 = vpop.permute.xlu0 %1486 }
0x22b5   :  { %v1489_v52 = vmul.f32 %v1487_v48, %v1484_v47 }
0x22b7   :  { %v1491_v54 = vadd.f32 %v1490_v51, %v1489_v52  ;;  %v1067_v51 = vcombine.high %v1065_v24, %v1065_v24 }
0x22b9   :  { %v1492_v55 = vpack.c.bf16 %v1491_v54, %v1491_v54 }
0x22bb   :  { %1494 = vrot.lane.b32.xlu1 %v1492_v55, %s3331_s4 }
0x232d   :  { %v1495_v56 = vpop.permute.xlu1 %1494 }
0x232e   :  { %2966 = vmatmul.mubr.msk.bf16.vlgmr.msra.gmra.mrb[32].mxu1 %vm226_vm4, %v1495_v56 }
0x232f   :  { %2978 = vmatpush3.bf16.msra.mxu1 %v3629_v14  ;;  %2981 = vmatprep.mubr.msk.bf16.mxu1 %vm3327_vm1, %v3326_v2  ;;  %v1066_v14 = vcombine.high %v1058_v36, %v1058_v36 }
0x2330   :  { %2979 = vmatprep.subr.bf16.mxu1 %v3326_v2 }
0x2333   :  { %2980 = vmatpush3.bf16.msra.mxu1 %v3638_v5 }
0x2334   :  { %2997 = vmatprep.subr.bf16.mxu1 %v3326_v2 }
0x2401   :  { %v1533_v57 = vpop.f32.mrb[32].mxu1 }
0x2402   :  { %v1546_v59 = vadd.f32 %v1533_v57, %v3681_v37  ;;  %v2967_v50 = vpop.f32.mrb[33].mxu1  ;;  %v1539_v35 = vadd.f32 %v1533_v57, %v1066_v14 }
0x2403   :  { %v1536_v60 = vpop.f32.mrb[34].mxu1 }
0x2404   :  { %v1554_v61 = vrot.slane %v1546_v59, %v3462_v22  ;;  %v2968_v6 = vpop.f32.mrb[35].mxu1  ;;  %v2592_v62 = vmul.f32 -1.442695, %v1539_v35  ;;  %v943_v60 = vrot.slane %v3665_v19, %v3462_v22 }
0x2406   :  { %1555 = vrot.lane.b32.xlu0 %v1554_v61, %s3330_s3  ;;  %3260 = vpow2.f32 %v2592_v62  ;;  %v3131_v61 = vld [vmem:[%s4060_s9 + $0x8] sm:$0xff]  }
0x2410   :  { %v3261_v63 = vpop.eup %3260 }
0x2411   :  { %v1543_v42 = vadd.f32 1.0, %v3261_v63 }
0x2413   :  { %3262 = vrcp.f32 %v1543_v42 }
0x241d   :  { %v3263_v5 = vpop.eup %3262 }
0x241e   :  { %v1565_v9 = vsub.f32 1.0, %v3263_v5  ;;  %v1571_v11 = vmul.f32 %v3263_v5, %v1491_v54 }
0x2478   :  { %v1556_v0 = vpop.permute.xlu0 %1555 }
0x2479   :  { %v1558_v3 = vmul.f32 %v3263_v5, %v1556_v0 }
0x247b   :  { %1560 = vrot.lane.b32.xlu1 %v1558_v3, %s3330_s3 }
0x24ed   :  { %v1561_v4 = vpop.permute.xlu1 %1560 }
0x24ee   :  { %v1563_v7 = vadd.f32 %v1561_v4, %v1066_v14  ;;  %v3132_v14 = vld [vmem:[%s4060_s9 + $0x10] sm:$0xff]  }
0x24f0   :  { %3264 = vtanh.f32 %v1563_v7 }
0x24fa   :  { %v3265_v8 = vpop.eup %3264 }
0x24fb   :  { %1567 = vrot.lane.b32.xlu0 %v3265_v8, %s3331_s4  ;;  %v3134_v8 = vld [vmem:[%s4062_s11] sm:$0xff]  }
0x256d   :  { %v1568_v10 = vpop.permute.xlu0 %1567 }
0x256e   :  { %v1570_v30 = vmul.f32 %v1568_v10, %v1565_v9  ;;  %v3135_v9 = vld [vmem:[%s4062_s11 + $0x8] sm:$0xff]   ;;  %v3136_v10 = vld [vmem:[%s4062_s11 + $0x10] sm:$0xff]  }
0x2570   :  { %v1572_v12 = vadd.f32 %v1571_v11, %v1570_v30  ;;  %v3137_v11 = vld [vmem:[%s4062_s11 + $0x18] sm:$0xff]   ;;  %v3138_v30 = vld [vmem:[%s4062_s11 + $0x20] sm:$0xff]  }
0x2572   :  { %v1573_v13 = vpack.c.bf16 %v1572_v12, %v1572_v12 }
0x2574   :  { %1575 = vrot.lane.b32.xlu1 %v1573_v13, %s3331_s4  ;;  %v3140_v13 = vld [vmem:[%s4062_s11 + $0x30] sm:$0xff]  }
0x25e6   :  { %v1576_v16 = vpop.permute.xlu1 %1575 }
0x25e7   :  { %2974 = vmatmul.mubr.msk.bf16.vlgmr.msra.gmra.mrb[28].mxu0 %vm226_vm4, %v1576_v16  ;;  %v3141_v16 = vld [vmem:[%s4062_s11 + $0x38] sm:$0xff]  }
0x25e8   :  { %2993 = vmatprep.mubr.msk.bf16.mxu0 %vm3327_vm1, %v3326_v2 }
0x26ba   :  { %v1614_v17 = vpop.f32.mrb[28].mxu0 }
0x26bb   :  { %v1627_v18 = vadd.f32 %v1614_v17, %v3681_v37  ;;  %v2975_v23 = vpop.f32.mrb[29].mxu0  ;;  %v1620_v25 = vadd.f32 %v1614_v17, %v1065_v24  ;;  %v2597_v17 = vld [vmem:[%s4061_s10] ss:$0 sm:$0xff] }
0x26bc   :  { %v1617_v20 = vpop.f32.mrb[30].mxu0 }
0x26bd   :  { %v1635_v29 = vrot.slane %v1627_v18, %v3462_v22  ;;  %v2976_v21 = vpop.f32.mrb[31].mxu0  ;;  %v2594_v58 = vmul.f32 -1.442695, %v1620_v25 }
0x26bf   :  { %1636 = vrot.lane.b32.xlu0 %v1635_v29, %s3330_s3  ;;  %3266 = vpow2.f32 %v2594_v58 }
0x26c9   :  { %v3267_v26 = vpop.eup %3266 }
0x26ca   :  { %v1624_v27 = vadd.f32 1.0, %v3267_v26 }
0x26cc   :  { %3268 = vrcp.f32 %v1624_v27 }
0x26d6   :  { %v3269_v28 = vpop.eup %3268 }
0x26d7   :  { %v1646_v49 = vsub.f32 1.0, %v3269_v28  ;;  %v1652_v1 = vmul.f32 %v3269_v28, %v1572_v12  ;;  %v3139_v12 = vld [vmem:[%s4062_s11 + $0x28] sm:$0xff]  }
0x2731   :  { %v1637_v31 = vpop.permute.xlu0 %1636 }
0x2732   :  { %v1639_v32 = vmul.f32 %v3269_v28, %v1637_v31  ;;  %v3142_v28 = vld [vmem:[%s4062_s11 + $0x40] sm:$0xff]   ;;  %v3143_v31 = vld [vmem:[%s4062_s11 + $0x48] sm:$0xff]  }
0x2734   :  { %1641 = vrot.lane.b32.xlu1 %v1639_v32, %s3330_s3  ;;  %v3144_v32 = vld [vmem:[%s4062_s11 + $0x50] sm:$0xff]  }
0x27a6   :  { %v1642_v33 = vpop.permute.xlu1 %1641 }
0x27a7   :  { %v1644_v34 = vadd.f32 %v1642_v33, %v1065_v24  ;;  %v3145_v33 = vld [vmem:[%s4062_s11 + $0x58] sm:$0xff]  }
0x27a9   :  { %3270 = vtanh.f32 %v1644_v34  ;;  %v3146_v34 = vld [vmem:[%s4062_s11 + $0x60] sm:$0xff]  }
0x27b3   :  { %v3271_v36 = vpop.eup %3270 }
0x27b4   :  { %1648 = vrot.lane.b32.xlu0 %v3271_v36, %s3331_s4  ;;  %v3147_v36 = vld [vmem:[%s4062_s11 + $0x68] sm:$0xff]  }
0x2826   :  { %v1649_v38 = vpop.permute.xlu0 %1648 }
0x2827   :  { %v1651_v53 = vmul.f32 %v1649_v38, %v1646_v49  ;;  %v3148_v49 = vld [vmem:[%s4062_s11 + $0x70] sm:$0xff]   ;;  %v3149_v38 = vld [vmem:[%s4062_s11 + $0x78] sm:$0xff]  }
0x2829   :  { %v1653_v39 = vadd.f32 %v1652_v1, %v1651_v53  ;;  %v2604_v1 = vld [vmem:[%s4063_s12] ss:$0 sm:$0xff] }
0x282b   :  { %v1654_v41 = vpack.c.bf16 %v1653_v39, %v1653_v39 }
0x282d   :  { %1656 = vrot.lane.b32.xlu1 %v1654_v41, %s3331_s4 }
0x289f   :  { %v1657_v40 = vpop.permute.xlu1 %1656 }
0x28a0   :  { %2982 = vmatmul.mubr.msk.bf16.vlgmr.msra.gmra.mrb[36].mxu1 %vm226_vm4, %v1657_v40 }
0x28a1   :  { %3013 = vmatprep.mubr.msk.bf16.mxu1 %vm3327_vm1, %v3326_v2  ;;  %2998 = vmatpush3.bf16.msra.mxu1 %v3134_v8  ;;  %v3161_v8 = vld [vmem:[%s4062_s11 + $0xd8] sm:$0xff]  }
0x28a2   :  { %2999 = vmatprep.subr.bf16.mxu1 %v3326_v2 }
0x28a5   :  { %3000 = vmatpush3.bf16.msra.mxu1 %v3135_v9  ;;  %v3162_v9 = vld [vmem:[%s4062_s11 + $0xe0] sm:$0xff]  }
0x28a6   :  { %3001 = vmatprep.subr.bf16.mxu1 %v3326_v2 }
0x28a9   :  { %3002 = vmatpush3.bf16.msra.mxu1 %v3136_v10  ;;  %v3163_v10 = vld [vmem:[%s4062_s11 + $0xe8] sm:$0xff]  }
0x28aa   :  { %3003 = vmatprep.subr.bf16.mxu1 %v3326_v2 }
0x28ad   :  { %3004 = vmatpush3.bf16.msra.mxu1 %v3137_v11  ;;  %v3164_v11 = vld [vmem:[%s4062_s11 + $0xf0] sm:$0xff]  }
0x28ae   :  { %3005 = vmatprep.subr.bf16.mxu1 %v3326_v2 }
0x28b1   :  { %3006 = vmatpush3.bf16.msra.mxu1 %v3138_v30  ;;  %v3165_v30 = vld [vmem:[%s4062_s11 + $0xf8] sm:$0xff]  }
0x28b2   :  { %3007 = vmatprep.subr.bf16.mxu1 %v3326_v2 }
0x28b5   :  { %3008 = vmatpush3.bf16.msra.mxu1 %v3139_v12  ;;  %v2658_v12 = vld [vmem:[%s4063_s12 + $0x2] ss:$0 sm:$0xff] }
0x28b6   :  { %3009 = vmatprep.subr.bf16.mxu1 %v3326_v2 }
0x28b9   :  { %3010 = vmatpush3.bf16.msra.mxu1 %v3140_v13 }
0x28ba   :  { %3011 = vmatprep.subr.bf16.mxu1 %v3326_v2 }
0x28bd   :  { %3012 = vmatpush3.bf16.msra.mxu1 %v3141_v16 }
0x28be   :  { %3037 = vmatprep.subr.bf16.mxu1 %v3326_v2 }
0x2973   :  { %v1695_v43 = vpop.f32.mrb[36].mxu1 }
0x2974   :  { %v1708_v44 = vadd.f32 %v1695_v43, %v3681_v37  ;;  %v2983_v45 = vpop.f32.mrb[37].mxu1  ;;  %v1701_v52 = vadd.f32 %v1695_v43, %v1067_v51  ;;  %v3130_v37 = vld [vmem:[%s4060_s9] sm:$0xff]  }
0x2975   :  { %v1698_v46 = vpop.f32.mrb[38].mxu1  ;;  %2986 = vmatpush3.bf16.msra.mxu0 %v3130_v37  ;;  %v3157_v37 = vld [vmem:[%s4062_s11 + $0xb8] sm:$0xff]  }
0x2976   :  { %v1716_v47 = vrot.slane %v1708_v44, %v3462_v22  ;;  %v2984_v48 = vpop.f32.mrb[39].mxu1  ;;  %v2596_v54 = vmul.f32 -1.442695, %v1701_v52  ;;  %2987 = vmatprep.subr.bf16.mxu0 %v3326_v2  ;;  %v3133_v22 = vld [vmem:[%s4060_s9 + $0x18] sm:$0xff]   ;;  %v3150_v52 = vld [vmem:[%s4062_s11 + $0x80] sm:$0xff]  }
0x2978   :  { %1717 = vrot.lane.b32.xlu0 %v1716_v47, %s3330_s3  ;;  %3272 = vpow2.f32 %v2596_v54  ;;  %v3151_v54 = vld [vmem:[%s4062_s11 + $0x88] sm:$0xff]  }
0x2979   :  { %2988 = vmatpush3.bf16.msra.mxu0 %v3131_v61 }
0x297a   :  { %2989 = vmatprep.subr.bf16.mxu0 %v3326_v2 }
0x297d   :  { %2990 = vmatpush3.bf16.msra.mxu0 %v3132_v14 }
0x297e   :  { %2991 = vmatprep.subr.bf16.mxu0 %v3326_v2 }
0x2981   :  { %2992 = vmatpush3.bf16.msra.mxu0 %v3133_v22 }
0x2982   :  { %v3273_v55 = vpop.eup %3272  ;;  %3017 = vmatprep.subr.bf16.mxu0 %v3326_v2 }
0x2983   :  { %v1705_v56 = vadd.f32 1.0, %v3273_v55  ;;  %v3152_v55 = vld [vmem:[%s4062_s11 + $0x90] sm:$0xff]  }
0x2985   :  { %3274 = vrcp.f32 %v1705_v56  ;;  %v3153_v56 = vld [vmem:[%s4062_s11 + $0x98] sm:$0xff]  }
0x298f   :  { %v3275_v57 = vpop.eup %3274 }
0x2990   :  { %v1727_v62 = vsub.f32 1.0, %v3275_v57  ;;  %v1733_v42 = vmul.f32 %v3275_v57, %v1653_v39 }
0x29ea   :  { %v1718_v59 = vpop.permute.xlu0 %1717 }
0x29eb   :  { %v1720_v50 = vmul.f32 %v3275_v57, %v1718_v59  ;;  %v3154_v57 = vld [vmem:[%s4062_s11 + $0xa0] sm:$0xff]   ;;  %v3155_v59 = vld [vmem:[%s4062_s11 + $0xa8] sm:$0xff]  }
0x29ed   :  { %1722 = vrot.lane.b32.xlu1 %v1720_v50, %s3330_s3  ;;  %v3156_v50 = vld [vmem:[%s4062_s11 + $0xb0] sm:$0xff]  }
0x29f1   :  { %1735 = vrot.lane.b32.xlu1 %v943_v60, %s3331_s4  ;;  %v2631_v60 = vld [vmem:[%s4063_s12 + $0x1] ss:$0 sm:$0xff] }
0x2a5f   :  { %v1723_v6 = vpop.permute.xlu1 %1722 }
0x2a60   :  { %v1725_v35 = vadd.f32 %v1723_v6, %v1067_v51 }
0x2a62   :  { %3276 = vtanh.f32 %v1725_v35 }
0x2a63   :  { %v1736_v3 = vpop.permute.xlu1 %1735 }
0x2a6c   :  { %v3277_v19 = vpop.eup %3276 }
0x2a6d   :  { %1729 = vrot.lane.b32.xlu0 %v3277_v19, %s3331_s4  ;;  %s3332_s4 = smov [#allocation2]  }
0x2adf   :  { %v1730_v63 = vpop.permute.xlu0 %1729 }
0x2ae0   :  { %v1732_v5 = vmul.f32 %v1730_v63, %v1727_v62 }
0x2ae2   :  { %v1734_v0 = vadd.f32 %v1733_v42, %v1732_v5 }
0x2ae4   :  { %v1738_v4 = vsel %vm226_vm4, %v1736_v3, %v1734_v0  ;;  %v3158_v3 = vld [vmem:[%s4062_s11 + $0xc0] sm:$0xff]  }
0x2ae5   :  { %v1739_v7 = vpack.c.bf16 %v1738_v4, %v1738_v4  ;;  %v3159_v4 = vld [vmem:[%s4062_s11 + $0xc8] sm:$0xff]  }
0x2ae7   :  { %2994 = vmatmul.mubr.msk.bf16.vlgmr.msra.gmra.mrb[32].mxu0 %vm67_vm3, %v1739_v7  ;;  %v3160_v7 = vld [vmem:[%s4062_s11 + $0xd0] sm:$0xff]  }
0x2ae8   :  { %3033 = vmatprep.mubr.msk.bf16.mxu0 %vm3327_vm1, %v3326_v2  ;;  %3018 = vmatpush3.bf16.msra.mxu0 %v3142_v28  ;;  %v3169_v28 = vld [vmem:[%s4062_s11 + $0x118] sm:$0xff]  }
0x2ae9   :  { %3019 = vmatprep.subr.bf16.mxu0 %v3326_v2 }
0x2aec   :  { %3020 = vmatpush3.bf16.msra.mxu0 %v3143_v31  ;;  %v3170_v31 = vld [vmem:[%s4062_s11 + $0x120] sm:$0xff]  }
0x2aed   :  { %3021 = vmatprep.subr.bf16.mxu0 %v3326_v2 }
0x2af0   :  { %3022 = vmatpush3.bf16.msra.mxu0 %v3144_v32  ;;  %v3171_v32 = vld [vmem:[%s4062_s11 + $0x128] sm:$0xff]  }
0x2af1   :  { %3023 = vmatprep.subr.bf16.mxu0 %v3326_v2 }
0x2af4   :  { %3024 = vmatpush3.bf16.msra.mxu0 %v3145_v33  ;;  %v3172_v33 = vld [vmem:[%s4062_s11 + $0x130] sm:$0xff]  }
0x2af5   :  { %3025 = vmatprep.subr.bf16.mxu0 %v3326_v2 }
0x2af8   :  { %3026 = vmatpush3.bf16.msra.mxu0 %v3146_v34  ;;  %v3173_v34 = vld [vmem:[%s4062_s11 + $0x138] sm:$0xff]  }
0x2af9   :  { %3027 = vmatprep.subr.bf16.mxu0 %v3326_v2 }
0x2afc   :  { %3028 = vmatpush3.bf16.msra.mxu0 %v3147_v36  ;;  %v2685_v36 = vld [vmem:[%s4063_s12 + $0x3] ss:$0 sm:$0xff] }
0x2afd   :  { %3029 = vmatprep.subr.bf16.mxu0 %v3326_v2 }
0x2b00   :  { %3030 = vmatpush3.bf16.msra.mxu0 %v3148_v49 }
0x2b01   :  { %3031 = vmatprep.subr.bf16.mxu0 %v3326_v2 }
0x2b04   :  { %3032 = vmatpush3.bf16.msra.mxu0 %v3149_v38 }
0x2b05   :  { %3057 = vmatprep.subr.bf16.mxu0 %v3326_v2 }
0x2bba   :  { %v1816_v18 = vpop.f32.mrb[32].mxu0 }
0x2bbb   :  { %v1817_v23 = vadd.f32 %v2597_v17, %v1816_v18  ;;  %v2995_v20 = vpop.f32.mrb[33].mxu0 }
0x2bbc   :  { %v1819_v29 = vpop.f32.mrb[34].mxu0 }
0x2bbd   :  { %v2603_v21 = vmul.f32 -1.442695, %v1817_v23  ;;  %v2996_v15 = vpop.f32.mrb[35].mxu0 }
0x2bbf   :  { %3278 = vpow2.f32 %v2603_v21 }
0x2bc9   :  { %v3279_v24 = vpop.eup %3278 }
0x2bca   :  { %v1825_v25 = vadd.f32 1.0, %v3279_v24 }
0x2bcc   :  { %3280 = vrcp.f32 %v1825_v25 }
0x2bd6   :  { %v3281_v58 = vpop.eup %3280 }
0x2bd7   :  { %v1828_v26 = vmul.f32 %v3281_v58, %v1817_v23  ;;  %v3166_v58 = vld [vmem:[%s4062_s11 + $0x100] sm:$0xff]  }
0x2bd9   :  { %v1829_v27 = vpack.c.bf16 %v1828_v26, %v1828_v26  ;;  %v3167_v26 = vld [vmem:[%s4062_s11 + $0x108] sm:$0xff]  }
0x2bdb   :  { %3014 = vmatmul.mubr.bf16.vlgmr.msra.gmra.mrb[40].mxu1 %v1829_v27  ;;  %v3168_v27 = vld [vmem:[%s4062_s11 + $0x110] sm:$0xff]  }
0x2bdc   :  { %3053 = vmatprep.mubr.msk.bf16.mxu1 %vm3327_vm1, %v3326_v2  ;;  %3038 = vmatpush3.bf16.msra.mxu1 %v3150_v52  ;;  %v3177_v52 = vld [vmem:[%s4064_s13 + $0x18] sm:$0xff]  }
0x2bdd   :  { %3039 = vmatprep.subr.bf16.mxu1 %v3326_v2 }
0x2be0   :  { %3040 = vmatpush3.bf16.msra.mxu1 %v3151_v54  ;;  %v3178_v54 = vld [vmem:[%s4064_s13 + $0x20] sm:$0xff]  }
0x2be1   :  { %3041 = vmatprep.subr.bf16.mxu1 %v3326_v2 }
0x2be4   :  { %3042 = vmatpush3.bf16.msra.mxu1 %v3152_v55  ;;  %v3179_v55 = vld [vmem:[%s4064_s13 + $0x28] sm:$0xff]  }
0x2be5   :  { %3043 = vmatprep.subr.bf16.mxu1 %v3326_v2 }
0x2be8   :  { %3044 = vmatpush3.bf16.msra.mxu1 %v3153_v56  ;;  %v3180_v56 = vld [vmem:[%s4064_s13 + $0x30] sm:$0xff]  }
0x2be9   :  { %3045 = vmatprep.subr.bf16.mxu1 %v3326_v2 }
0x2bec   :  { %3046 = vmatpush3.bf16.msra.mxu1 %v3154_v57  ;;  %v3181_v57 = vld [vmem:[%s4064_s13 + $0x38] sm:$0xff]  }
0x2bed   :  { %3047 = vmatprep.subr.bf16.mxu1 %v3326_v2 }
0x2bf0   :  { %3048 = vmatpush3.bf16.msra.mxu1 %v3155_v59  ;;  %v2712_v59 = vld [vmem:[%s4063_s12 + $0x4] ss:$0 sm:$0xff]  ;;  %s2551_s12 = sshll.u32 %s3332_s4, 4  ;;  %s2552_s12 = int_to_ptr.vmem [resolvable:$true] %s2551_s12 }
0x2bf1   :  { %3049 = vmatprep.subr.bf16.mxu1 %v3326_v2  ;;  %s3302_s25 = scalar_lea.vmem %s2552_s12, 32  ;;  %p3307_p1 = scmp.lt.s32.totalorder %s2552_s12, %s2552_s12 }
0x2bf2   :  { %p3303_p0 = scmp.ne.s32.totalorder %s2552_s12, %s3302_s25  ;;  %p3308_p2 = scmp.lt.s32.totalorder %s3302_s25, %s3302_s25 }
0x2bf4   :  { %3050 = vmatpush3.bf16.msra.mxu1 %v3156_v50  ;;  %p3309_p3 = por %p3308_p2, %p3307_p1 }
0x2bf5   :  { %3051 = vmatprep.subr.bf16.mxu1 %v3326_v2 }
0x2bf6   :  { %p3310_p4 = pnand %p3309_p3, %p3303_p0 }
0x2bf8   :  { %3052 = vmatpush3.bf16.msra.mxu1 %v3157_v37 }
0x2bf9   :  { %3077 = vmatprep.subr.bf16.mxu1 %v3326_v2 }
0x2cae   :  { %v1935_v53 = vpop.f32.mrb[40].mxu1 }
0x2caf   :  { %v1936_v39 = vadd.f32 %v2604_v1, %v1935_v53  ;;  %v3015_v41 = vpop.f32.mrb[41].mxu1 }
0x2cb0   :  { %v1938_v40 = vpop.f32.mrb[42].mxu1 }
0x2cb1   :  { %v2613_v43 = vmul.f32 -1.442695, %v1936_v39  ;;  %v3016_v44 = vpop.f32.mrb[43].mxu1 }
0x2cb3   :  { %3282 = vpow2.f32 %v2613_v43 }
0x2cbd   :  { %v3283_v45 = vpop.eup %3282 }
0x2cbe   :  { %v1944_v46 = vadd.f32 1.0, %v3283_v45 }
0x2cc0   :  { %3284 = vrcp.f32 %v1944_v46 }
0x2cca   :  { %v3285_v47 = vpop.eup %3284 }
0x2ccb   :  { %v1947_v48 = vmul.f32 %v3285_v47, %v1936_v39  ;;  %v3174_v47 = vld [vmem:[%s4064_s13] sm:$0xff]  }
0x2ccd   :  { %v1948_v51 = vpack.c.bf16 %v1947_v48, %v1947_v48  ;;  %v3175_v48 = vld [vmem:[%s4064_s13 + $0x8] sm:$0xff]  }
0x2ccf   :  { %3034 = vmatmul.mubr.bf16.vlgmr.msra.gmra.mrb[36].mxu0 %v1948_v51  ;;  %v3176_v51 = vld [vmem:[%s4064_s13 + $0x10] sm:$0xff]  }
0x2cd0   :  { %3073 = vmatprep.mubr.msk.bf16.mxu0 %vm3327_vm1, %v3326_v2  ;;  %3058 = vmatpush3.bf16.msra.mxu0 %v3158_v3 }
0x2cd1   :  { %3059 = vmatprep.subr.bf16.mxu0 %v3326_v2 }
0x2cd4   :  { %3060 = vmatpush3.bf16.msra.mxu0 %v3159_v4 }
0x2cd5   :  { %3061 = vmatprep.subr.bf16.mxu0 %v3326_v2 }
0x2cd8   :  { %3062 = vmatpush3.bf16.msra.mxu0 %v3160_v7 }
0x2cd9   :  { %3063 = vmatprep.subr.bf16.mxu0 %v3326_v2 }
0x2cdc   :  { %3064 = vmatpush3.bf16.msra.mxu0 %v3161_v8 }
0x2cdd   :  { %3065 = vmatprep.subr.bf16.mxu0 %v3326_v2 }
0x2ce0   :  { %3066 = vmatpush3.bf16.msra.mxu0 %v3162_v9 }
0x2ce1   :  { %3067 = vmatprep.subr.bf16.mxu0 %v3326_v2 }
0x2ce4   :  { %3068 = vmatpush3.bf16.msra.mxu0 %v3163_v10 }
0x2ce5   :  { %3069 = vmatprep.subr.bf16.mxu0 %v3326_v2 }
0x2ce8   :  { %3070 = vmatpush3.bf16.msra.mxu0 %v3164_v11 }
0x2ce9   :  { %3071 = vmatprep.subr.bf16.mxu0 %v3326_v2 }
0x2cec   :  { %3072 = vmatpush3.bf16.msra.mxu0 %v3165_v30 }
0x2ced   :  { %3097 = vmatprep.subr.bf16.mxu0 %v3326_v2 }
0x2da2   :  { %v2056_v61 = vpop.f32.mrb[36].mxu0 }
0x2da3   :  { %v2057_v6 = vadd.f32 %v2631_v60, %v2056_v61  ;;  %v3035_v14 = vpop.f32.mrb[37].mxu0 }
0x2da4   :  { %v2059_v35 = vpop.f32.mrb[38].mxu0 }
0x2da5   :  { %v2640_v22 = vmul.f32 -1.442695, %v2057_v6  ;;  %v3036_v19 = vpop.f32.mrb[39].mxu0 }
0x2da7   :  { %3286 = vpow2.f32 %v2640_v22 }
0x2db1   :  { %v3287_v62 = vpop.eup %3286 }
0x2db2   :  { %v2065_v63 = vadd.f32 1.0, %v3287_v62 }
0x2db4   :  { %3288 = vrcp.f32 %v2065_v63  ;;  %v2722_v63 = vld [vmem:[%s4065_s14] ss:$0 sm:$0xff] }
0x2dbe   :  { %v3289_v42 = vpop.eup %3288 }
0x2dbf   :  { %v2068_v5 = vmul.f32 %v3289_v42, %v2057_v6 }
0x2dc1   :  { %v2069_v0 = vpack.c.bf16 %v2068_v5, %v2068_v5 }
0x2dc3   :  { %3054 = vmatmul.mubr.bf16.vlgmr.msra.gmra.mrb[44].mxu1 %v2069_v0 }
0x2dc4   :  { %3093 = vmatprep.mubr.msk.bf16.mxu1 %vm3327_vm1, %v3326_v2  ;;  %3078 = vmatpush3.bf16.msra.mxu1 %v3166_v58 }
0x2dc5   :  { %3079 = vmatprep.subr.bf16.mxu1 %v3326_v2 }
0x2dc8   :  { %3080 = vmatpush3.bf16.msra.mxu1 %v3167_v26 }
0x2dc9   :  { %3081 = vmatprep.subr.bf16.mxu1 %v3326_v2 }
0x2dcc   :  { %3082 = vmatpush3.bf16.msra.mxu1 %v3168_v27 }
0x2dcd   :  { %3083 = vmatprep.subr.bf16.mxu1 %v3326_v2 }
0x2dd0   :  { %3084 = vmatpush3.bf16.msra.mxu1 %v3169_v28 }
0x2dd1   :  { %3085 = vmatprep.subr.bf16.mxu1 %v3326_v2 }
0x2dd4   :  { %3086 = vmatpush3.bf16.msra.mxu1 %v3170_v31 }
0x2dd5   :  { %3087 = vmatprep.subr.bf16.mxu1 %v3326_v2 }
0x2dd8   :  { %3088 = vmatpush3.bf16.msra.mxu1 %v3171_v32 }
0x2dd9   :  { %3089 = vmatprep.subr.bf16.mxu1 %v3326_v2 }
0x2ddc   :  { %3090 = vmatpush3.bf16.msra.mxu1 %v3172_v33 }
0x2ddd   :  { %3091 = vmatprep.subr.bf16.mxu1 %v3326_v2 }
0x2de0   :  { %3092 = vmatpush3.bf16.msra.mxu1 %v3173_v34 }
0x2e96   :  { %v2177_v13 = vpop.f32.mrb[44].mxu1 }
0x2e97   :  { %v2178_v16 = vadd.f32 %v2658_v12, %v2177_v13  ;;  %v3055_v17 = vpop.f32.mrb[45].mxu1 }
0x2e98   :  { %v2180_v18 = vpop.f32.mrb[46].mxu1 }
0x2e99   :  { %v2667_v23 = vmul.f32 -1.442695, %v2178_v16  ;;  %v3056_v20 = vpop.f32.mrb[47].mxu1 }
0x2e9b   :  { %3290 = vpow2.f32 %v2667_v23 }
0x2ea5   :  { %v3291_v29 = vpop.eup %3290 }
0x2ea6   :  { %v2186_v21 = vadd.f32 1.0, %v3291_v29 }
0x2ea8   :  { %3292 = vrcp.f32 %v2186_v21 }
0x2eb2   :  { %v3293_v15 = vpop.eup %3292 }
0x2eb3   :  { %v2189_v24 = vmul.f32 %v3293_v15, %v2178_v16 }
0x2eb5   :  { %v2190_v25 = vpack.c.bf16 %v2189_v24, %v2189_v24 }
0x2eb7   :  { %3074 = vmatmul.mubr.bf16.vlgmr.msra.gmra.mrb[40].mxu0 %v2190_v25 }
0x2eb8   :  { %3113 = vmatprep.mubr.msk.bf16.mxu0 %vm3327_vm1, %v3326_v2  ;;  %3098 = vmatpush3.bf16.msra.mxu0 %v3174_v47 }
0x2eb9   :  { %3099 = vmatprep.subr.bf16.mxu0 %v3326_v2 }
0x2ebc   :  { %3100 = vmatpush3.bf16.msra.mxu0 %v3175_v48 }
0x2ebd   :  { %3101 = vmatprep.subr.bf16.mxu0 %v3326_v2 }
0x2ec0   :  { %3102 = vmatpush3.bf16.msra.mxu0 %v3176_v51 }
0x2ec1   :  { %3103 = vmatprep.subr.bf16.mxu0 %v3326_v2 }
0x2ec4   :  { %3104 = vmatpush3.bf16.msra.mxu0 %v3177_v52 }
0x2ec5   :  { %3105 = vmatprep.subr.bf16.mxu0 %v3326_v2 }
0x2ec8   :  { %3106 = vmatpush3.bf16.msra.mxu0 %v3178_v54 }
0x2ec9   :  { %3107 = vmatprep.subr.bf16.mxu0 %v3326_v2 }
0x2ecc   :  { %3108 = vmatpush3.bf16.msra.mxu0 %v3179_v55 }
0x2ecd   :  { %3109 = vmatprep.subr.bf16.mxu0 %v3326_v2 }
0x2ed0   :  { %3110 = vmatpush3.bf16.msra.mxu0 %v3180_v56 }
0x2ed1   :  { %3111 = vmatprep.subr.bf16.mxu0 %v3326_v2 }
0x2ed4   :  { %3112 = vmatpush3.bf16.msra.mxu0 %v3181_v57 }
0x2f8a   :  { %v2298_v49 = vpop.f32.mrb[40].mxu0 }
0x2f8b   :  { %v2299_v38 = vadd.f32 %v2685_v36, %v2298_v49  ;;  %v3075_v1 = vpop.f32.mrb[41].mxu0 }
0x2f8c   :  { %v2301_v53 = vpop.f32.mrb[42].mxu0 }
0x2f8d   :  { %v2694_v39 = vmul.f32 -1.442695, %v2299_v38  ;;  %v3076_v41 = vpop.f32.mrb[43].mxu0 }
0x2f8f   :  { %3294 = vpow2.f32 %v2694_v39 }
0x2f99   :  { %v3295_v40 = vpop.eup %3294 }
0x2f9a   :  { %v2307_v43 = vadd.f32 1.0, %v3295_v40 }
0x2f9c   :  { %3296 = vrcp.f32 %v2307_v43 }
0x2fa6   :  { %v3297_v44 = vpop.eup %3296 }
0x2fa7   :  { %v2310_v45 = vmul.f32 %v3297_v44, %v2299_v38 }
0x2fa9   :  { %v2311_v46 = vpack.c.bf16 %v2310_v45, %v2310_v45 }
0x2fab   :  { %3094 = vmatmul.mubr.bf16.vlgmr.msra.gmra.mrb[48].mxu1 %v2311_v46 }
0x307e   :  { %v2419_v50 = vpop.f32.mrb[48].mxu1 }
0x307f   :  { %v2420_v37 = vadd.f32 %v2712_v59, %v2419_v50  ;;  %v3095_v60 = vpop.f32.mrb[49].mxu1 }
0x3080   :  { %v2422_v61 = vpop.f32.mrb[50].mxu1 }
0x3081   :  { %v2721_v6 = vmul.f32 -1.442695, %v2420_v37  ;;  %v3096_v14 = vpop.f32.mrb[51].mxu1 }
0x3083   :  { %3298 = vpow2.f32 %v2721_v6 }
0x308d   :  { %v3299_v35 = vpop.eup %3298 }
0x308e   :  { %v2428_v22 = vadd.f32 1.0, %v3299_v35 }
0x3090   :  { %3300 = vrcp.f32 %v2428_v22 }
0x309a   :  { %v3301_v2 = vpop.eup %3300 }
0x309b   :  { %v2431_v19 = vmul.f32 %v3301_v2, %v2420_v37 }
0x309d   :  { %v2432_v62 = vpack.c.bf16 %v2431_v19, %v2431_v19 }
0x309f   :  { %3114 = vmatmul.mubr.bf16.vlgmr.msra.gmra.mrb[44].mxu0 %v2432_v62 }
0x3172   :  { %v2538_v42 = vpop.f32.mrb[44].mxu0 }
0x3173   :  { %v2539_v5 = vadd.f32 %v2722_v63, %v2538_v42  ;;  %v3115_v0 = vpop.f32.mrb[45].mxu0 }
0x3174   :  { %v2541_v3 = vpop.f32.mrb[46].mxu0 }
0x3175   :  { %2544 = vst [vmem:[#allocation2] sm:$0x3] %v2539_v5  ;;  %v3116_v4 = vpop.f32.mrb[47].mxu0 }
0x3176   :  { %3313 = shalt.err (!%p3310_p4)
}
0x3177   :  { %s3314_s14 = scalar_lea.hbm %s4066_s15, 32 }
0x3178   :  { %p3315_p5 = scmp.ne.s32.totalorder %s4066_s15, %s3314_s14  ;;  %p3318_p6 = scmp.lt.u32.totalorder %s3314_s14, %s4066_s15 }
0x317a   :  { %p3320_p7 = pnand %p3318_p6, %p3315_p5 }
0x317c   :  { %3323 = shalt.err (!%p3320_p7)
}
0x317d   :  { %2554 = dma.vmem_to_hbm [thread:$0]  %s2552_s12, 32, %s4066_s15, [#allocation3]  }
0x317e   :  { %3324 = dma.done.wait [#allocation3], 32  }
0x317f   :  { %3325 = vsyncadd [#allocation3], 4294967264 }
0x3180   :  { %2558 = vsyncpa [#allocation3], 1 }

</bundles_post_ra>
